<compile_context>
chip_gen: v7x
topology: tpu7x:2x2x1
jax: 0.10.0
libtpu: 0.0.40
codegen_flags: <defaults>
</compile_context>

<pallas_src>
import jax
import jax.numpy as jnp
import numpy as np
from jax.experimental import pallas as pl
from jax.experimental.pallas import tpu as pltpu

C1_PAD = 8            # conv1 out-channels padded 6 -> 8 (one sublane tile)
L0 = 1024             # pixels per corner row after the 48x48 -> 64x64 spatial pad
N_POS = 16            # final 4x4 spatial positions (3x3 real, rest zero-masked)
FC1_KDIM = 64 * N_POS # dense conv->fc interface width (1024)
FC1_NPAD = 384        # 300 -> 384
FC2_NPAD = 256        # 150 -> 256


# ----------------------------------------------------------------------------
# Kernels
# ----------------------------------------------------------------------------
def _conv_stack_kernel(x_ref, w1, b1, w2, b2, w3, b3, w4, b4, o_ref):
    """One image per grid step.  Activations are (channels, pixels); pixels are in
    corner-major order, so each stage's 2x2 max-pool is a max over the 4 aligned
    lane quarters of that stage's matmul output."""
    x = x_ref[...]                                   # (4, 1024): corner x pixel, f32

    # conv1 (Cin=1) on the VPU with the pool folded in front via the sign split:
    #   max_d relu(w*x_d + b) = relu(w*max_d(x) + b) if w >= 0 else relu(w*min_d(x) + b)
    xmax = jnp.max(x, axis=0, keepdims=True)         # (1, 1024)
    xmin = jnp.min(x, axis=0, keepdims=True)         # (1, 1024)
    w1v = w1[...]                                    # (8, 1): 6 real rows + 2 zeros
    a = jnp.maximum(jnp.where(w1v >= 0.0, xmax, xmin) * w1v + b1[...], 0.0)  # (8,1024)

    # conv2..conv4: ONE MXU dot per stage (Cout, Cin) @ (Cin, P); the 2x2 pool is a
    # max over the 4 aligned lane quarters; bias + ReLU applied AFTER the max (exact).
    for w_ref, b_ref in ((w2, b2), (w3, b3), (w4, b4)):
        z = jnp.dot(w_ref[...], a, preferred_element_type=jnp.float32)   # (Cout, P)
        q = z.shape[1] // 4
        z = jnp.maximum(jnp.maximum(z[:, 0 * q:1 * q], z[:, 1 * q:2 * q]),
                        jnp.maximum(z[:, 2 * q:3 * q], z[:, 3 * q:4 * q]))
        a = jnp.maximum(z + b_ref[...], 0.0)         # (Cout, P/4)
    o_ref[...] = a                                   # (64, 16): channels x positions


def _fc_stack_kernel(x_ref, w1, b1, w2, b2, w3, b3, o_ref):
    # Matmul operands in bf16 (f32 accumulate); all elementwise math in f32.
    h = jnp.dot(x_ref[...].astype(jnp.bfloat16), w1[...],
                preferred_element_type=jnp.float32) + b1[...]
    h = jnp.maximum(h, 0.0)
    h = jnp.dot(h.astype(jnp.bfloat16), w2[...],
                preferred_element_type=jnp.float32) + b2[...]
    h = jnp.maximum(h, 0.0)
    # fc3 has N=1: VPU multiply + lane reduction instead of a padded MXU matmul.
    logit = jnp.sum(h * w3[...], axis=-1, keepdims=True) + b3[...]
    o_ref[...] = jax.nn.sigmoid(logit)


# ----------------------------------------------------------------------------
# One-time parameter packing (transposes, padding, fc1 flatten-permutation)
# ----------------------------------------------------------------------------
def _pad2(a, rows, cols):
    return jnp.pad(a, ((0, rows - a.shape[0]), (0, cols - a.shape[1])))


def pack_params(params):
    (w1, b1), (w2, b2), (w3, b3), (w4, b4) = params["convs"]   # each (Cin, Cout)
    conv_packed = (
        _pad2(w1.T, C1_PAD, 1), _pad2(b1.T, C1_PAD, 1),        # (8, 1) each
        _pad2(w2.T, 16, C1_PAD), b2.T,                         # (16, 8), (16, 1)
        w3.T, b3.T,                                            # (32, 16), (32, 1)
        w4.T, b4.T,                                            # (64, 32), (64, 1)
    )

    # fc1: reproduce PyTorch's NCHW flatten (flat = c*9 + h*3 + w) against the
    # kernel's dense (c, pos=h*4+w) interface.  Rows for the 7 padded positions
    # stay exactly zero -> the 48->64 spatial-pad garbage is masked out.
    w1f, b1f = params["fc1"]                                   # (576, 300), (1, 300)
    w1_chw = w1f.reshape(64, 3, 3, 300)
    w1r = jnp.zeros((64, 4, 4, 300), jnp.float32).at[:, :3, :3, :].set(w1_chw)
    w1p = _pad2(w1r.reshape(FC1_KDIM, 300), FC1_KDIM, FC1_NPAD).astype(jnp.bfloat16)
    b1p = _pad2(b1f, 1, FC1_NPAD)

    w2f, b2f = params["fc2"]                                   # (300, 150), (1, 150)
    w2p = _pad2(w2f, FC1_NPAD, FC2_NPAD).astype(jnp.bfloat16)
    b2p = _pad2(b2f, 1, FC2_NPAD)

    w3f, b3f = params["fc3"]                                   # (150, 1), (1, 1)
    w3row = _pad2(w3f.T, 1, FC2_NPAD)                          # (1, 256) f32

    return {"conv": conv_packed, "fc": (w1p, b1p, w2p, b2p, w3row, b3f)}


# ----------------------------------------------------------------------------
# Forward pass: one tiny input reorder + 2 fused pallas_calls
# ----------------------------------------------------------------------------
def _reorder_input(x_nchw):
    """(B,1,48,48) NCHW -> (B, 4, 1024): 4 corner rows x 1024 corner-major pixels.
    Dense 16 KB/image in HBM (no lane padding)."""
    b = x_nchw.shape[0]
    img = jnp.pad(x_nchw[:, 0], ((0, 0), (0, 16), (0, 16)))    # (B, 64, 64)
    img = img.reshape(b, 4, 2, 2, 2, 2, 4, 2, 2, 2, 2)
    # dims: (b, h_top,h3,h2,h1,h0, w_top,w3,w2,w1,w0)
    #   ->  (b, h0,w0, h1,w1, h2,w2, h3,w3, h_top,w_top)
    img = jnp.transpose(img, (0, 5, 10, 4, 9, 3, 8, 2, 7, 1, 6))
    return img.reshape(b, 4, L0)


def net_forward(x_nchw, packed):
    b_sz = x_nchw.shape[0]
    x_in = _reorder_input(x_nchw)                              # (B, 4, 1024) f32

    conv_in_specs = [pl.BlockSpec((None, 4, L0), lambda b: (b, 0, 0))]
    conv_in_specs += [pl.BlockSpec(p.shape, lambda b: (0, 0)) for p in packed["conv"]]

    conv_out = pl.pallas_call(
        _conv_stack_kernel,
        out_shape=jax.ShapeDtypeStruct((b_sz, 64, N_POS), jnp.float32),
        grid=(b_sz,),
        in_specs=conv_in_specs,
        out_specs=pl.BlockSpec((None, 64, N_POS), lambda b: (b, 0, 0)),
        compiler_params=pltpu.CompilerParams(
            dimension_semantics=("parallel",)),                # both TCs on v7x
    )(x_in, *packed["conv"])

    xf = conv_out.reshape(b_sz, FC1_KDIM)                      # (B, 1024), c*16 + pos

    # FC stack: single-step, whole batch (M = B).  At small B it is pure weight
    # streaming; gridding / per-image fusion would duplicate the weight DMA per core.
    fc_args = (xf,) + packed["fc"]
    out = pl.pallas_call(
        _fc_stack_kernel,
        out_shape=jax.ShapeDtypeStruct((b_sz, 1), jnp.float32),
        in_specs=[pl.BlockSpec(a.shape, lambda *_: (0, 0)) for a in fc_args],
        out_specs=pl.BlockSpec((b_sz, 1), lambda *_: (0, 0)),
    )(*fc_args)
    return out


# ----------------------------------------------------------------------------
# Deterministic parameter init (PyTorch-style uniform(-1/sqrt(fan_in), ...))
# ----------------------------------------------------------------------------
def init_params(key):
    def uinit(k, shape, fan_in):
        bound = 1.0 / np.sqrt(fan_in)
        return jax.random.uniform(k, shape, jnp.float32, -bound, bound)

    keys = jax.random.split(key, 14)
    conv_dims = [(1, 6), (6, 16), (16, 32), (32, 64)]
    convs = []
    for i, (cin, cout) in enumerate(conv_dims):
        w = uinit(keys[2 * i], (cin, cout), cin)               # (Cin, Cout) for x @ W
        b = uinit(keys[2 * i + 1], (1, cout), cin)
        convs.append((w, b))
    fc_dims = [(64 * 3 * 3, 300), (300, 150), (150, 1)]
    fcs = []
    for j, (fin, fout) in enumerate(fc_dims):
        w = uinit(keys[8 + 2 * j], (fin, fout), fin)           # (in, out) for x @ W
        b = uinit(keys[9 + 2 * j], (1, fout), fin)
        fcs.append((w, b))
    return {"convs": convs, "fc1": fcs[0], "fc2": fcs[1], "fc3": fcs[2]}


# ----------------------------------------------------------------------------
# Pure-JAX f32 reference (same math as the PyTorch module)
# ----------------------------------------------------------------------------
def reference_forward(x_nchw, params):
    x = jnp.transpose(x_nchw, (0, 2, 3, 1))
    for (w, b) in params["convs"]:
        x = jnp.maximum(jnp.einsum("bhwc,cd->bhwd", x, w) + b[0], 0.0)
        bb, h, ww_, c = x.shape
        x = x.reshape(bb, h // 2, 2, ww_ // 2, 2, c).max(axis=(2, 4))
    x = jnp.transpose(x, (0, 3, 1, 2)).reshape(x.shape[0], -1)
    x = jnp.maximum(x @ params["fc1"][0] + params["fc1"][1], 0.0)
    x = jnp.maximum(x @ params["fc2"][0] + params["fc2"][1], 0.0)
    x = jax.nn.sigmoid(x @ params["fc3"][0] + params["fc3"][1])
    return x


if __name__ == "__main__":
    key = jax.random.PRNGKey(0)
    k_x, k_p = jax.random.split(key)
    # Input: NCHW (B=2, C=1, 48, 48) — 48 -> 24 -> 12 -> 6 -> 3 matches fc1's 64*3*3.
    x = jax.random.normal(k_x, (2, 1, 48, 48), dtype=jnp.float32)
    params = init_params(k_p)
    packed = pack_params(params)   # one-time padding / transposes, off the hot path

    fwd = jax.jit(net_forward)
    out = jax.block_until_ready(fwd(x, packed))
    ref = jax.block_until_ready(reference_forward(x, params))

    assert out.shape == (2, 1), out.shape
    # Conv path is exact f32; fc1/fc2 run in bf16 (f32 accumulate) -> ~1e-3 budget.
    err = float(np.max(np.abs(np.asarray(out) - np.asarray(ref))))
    assert np.allclose(np.asarray(out), np.asarray(ref), atol=2e-2, rtol=2e-2), err
    print("KERNEL_OK")
</pallas_src>

<mosaic_0001>
module attributes {stable_mosaic.version = 11 : i64} {
  func.func @_conv_stack_kernel(%arg0: i32, %arg1: memref<1x4x1024xf32, #tpu.memory_space<vmem>>, %arg2: memref<8x1xf32, #tpu.memory_space<vmem>>, %arg3: memref<8x1xf32, #tpu.memory_space<vmem>>, %arg4: memref<16x8xf32, #tpu.memory_space<vmem>>, %arg5: memref<16x1xf32, #tpu.memory_space<vmem>>, %arg6: memref<32x16xf32, #tpu.memory_space<vmem>>, %arg7: memref<32x1xf32, #tpu.memory_space<vmem>>, %arg8: memref<64x32xf32, #tpu.memory_space<vmem>>, %arg9: memref<64x1xf32, #tpu.memory_space<vmem>>, %arg10: memref<1x64x16xf32, #tpu.memory_space<vmem>>) attributes {dimension_semantics = [#tpu.dimension_semantics<parallel>], iteration_bounds = array<i64: 2>, scalar_prefetch = 0 : i64, scratch_operands = 0 : i64, tpu.core_type = #tpu.core_type<tc>, window_params = [{transform_indices = @transform_0, window_bounds = array<i64: 1, 4, 1024>}, {pipeline_mode = #tpu.pipeline_mode<synchronous>, transform_indices = @transform_1, window_bounds = array<i64: 8, 1>}, {pipeline_mode = #tpu.pipeline_mode<synchronous>, transform_indices = @transform_2, window_bounds = array<i64: 8, 1>}, {pipeline_mode = #tpu.pipeline_mode<synchronous>, transform_indices = @transform_3, window_bounds = array<i64: 16, 8>}, {pipeline_mode = #tpu.pipeline_mode<synchronous>, transform_indices = @transform_4, window_bounds = array<i64: 16, 1>}, {pipeline_mode = #tpu.pipeline_mode<synchronous>, transform_indices = @transform_5, window_bounds = array<i64: 32, 16>}, {pipeline_mode = #tpu.pipeline_mode<synchronous>, transform_indices = @transform_6, window_bounds = array<i64: 32, 1>}, {pipeline_mode = #tpu.pipeline_mode<synchronous>, transform_indices = @transform_7, window_bounds = array<i64: 64, 32>}, {pipeline_mode = #tpu.pipeline_mode<synchronous>, transform_indices = @transform_8, window_bounds = array<i64: 64, 1>}, {transform_indices = @transform_9, window_bounds = array<i64: 1, 64, 16>}]} {
    %c0 = arith.constant 0 : index
    %c0_0 = arith.constant 0 : index
    %c0_1 = arith.constant 0 : index
    %0 = vector.load %arg1[%c0, %c0_0, %c0_1] : memref<1x4x1024xf32, #tpu.memory_space<vmem>>, vector<1x4x1024xf32>
    %1 = vector.shape_cast %0 : vector<1x4x1024xf32> to vector<4x1024xf32>
    %cst = arith.constant dense<0xFF800000> : vector<1024xf32>
    %2 = vector.multi_reduction <maximumf>, %1, %cst [0] : vector<4x1024xf32> to vector<1024xf32>
    %3 = vector.shape_cast %2 : vector<1024xf32> to vector<1x1024xf32>
    %cst_2 = arith.constant dense<0x7F800000> : vector<1024xf32>
    %4 = vector.multi_reduction <minimumf>, %1, %cst_2 [0] : vector<4x1024xf32> to vector<1024xf32>
    %5 = vector.shape_cast %4 : vector<1024xf32> to vector<1x1024xf32>
    %c0_3 = arith.constant 0 : index
    %c0_4 = arith.constant 0 : index
    %6 = vector.load %arg2[%c0_3, %c0_4] : memref<8x1xf32, #tpu.memory_space<vmem>>, vector<8x1xf32>
    %cst_5 = arith.constant 0.000000e+00 : f32
    %7 = vector.broadcast %cst_5 : f32 to vector<8x1xf32>
    %8 = arith.cmpf oge, %6, %7 : vector<8x1xf32>
    %9 = vector.shape_cast %8 : vector<8x1xi1> to vector<8x1xi1>
    %10 = vector.broadcast %9 : vector<8x1xi1> to vector<8x1024xi1>
    %11 = vector.shape_cast %3 : vector<1x1024xf32> to vector<1x1024xf32>
    %12 = vector.broadcast %11 : vector<1x1024xf32> to vector<8x1024xf32>
    %13 = vector.shape_cast %5 : vector<1x1024xf32> to vector<1x1024xf32>
    %14 = vector.broadcast %13 : vector<1x1024xf32> to vector<8x1024xf32>
    %15 = arith.select %10, %12, %14 : vector<8x1024xi1>, vector<8x1024xf32>
    %16 = vector.broadcast %6 : vector<8x1xf32> to vector<8x1024xf32>
    %17 = arith.mulf %15, %16 : vector<8x1024xf32>
    %c0_6 = arith.constant 0 : index
    %c0_7 = arith.constant 0 : index
    %18 = vector.load %arg3[%c0_6, %c0_7] : memref<8x1xf32, #tpu.memory_space<vmem>>, vector<8x1xf32>
    %19 = vector.broadcast %18 : vector<8x1xf32> to vector<8x1024xf32>
    %20 = arith.addf %17, %19 : vector<8x1024xf32>
    %cst_8 = arith.constant 0.000000e+00 : f32
    %21 = vector.broadcast %cst_8 : f32 to vector<8x1024xf32>
    %22 = arith.maximumf %20, %21 : vector<8x1024xf32>
    %c0_9 = arith.constant 0 : index
    %c0_10 = arith.constant 0 : index
    %23 = vector.load %arg4[%c0_9, %c0_10] : memref<16x8xf32, #tpu.memory_space<vmem>>, vector<16x8xf32>
    %cst_11 = arith.constant dense<0.000000e+00> : vector<16x1024xf32>
    %24 = tpu.matmul %23, %22, %cst_11 {dimension_numbers = #tpu.dot_dimension_numbers<[1], [0], [0], [1], [0, 0, 1, 1], [], []>} : vector<16x8xf32>, vector<8x1024xf32>, vector<16x1024xf32> -> vector<16x1024xf32>
    %25 = vector.extract_strided_slice %24 {offsets = [0, 0], sizes = [16, 256], strides = [1, 1]} : vector<16x1024xf32> to vector<16x256xf32>
    %26 = vector.extract_strided_slice %24 {offsets = [0, 256], sizes = [16, 256], strides = [1, 1]} : vector<16x1024xf32> to vector<16x256xf32>
    %27 = arith.maximumf %25, %26 : vector<16x256xf32>
    %28 = vector.extract_strided_slice %24 {offsets = [0, 512], sizes = [16, 256], strides = [1, 1]} : vector<16x1024xf32> to vector<16x256xf32>
    %29 = vector.extract_strided_slice %24 {offsets = [0, 768], sizes = [16, 256], strides = [1, 1]} : vector<16x1024xf32> to vector<16x256xf32>
    %30 = arith.maximumf %28, %29 : vector<16x256xf32>
    %31 = arith.maximumf %27, %30 : vector<16x256xf32>
    %c0_12 = arith.constant 0 : index
    %c0_13 = arith.constant 0 : index
    %32 = vector.load %arg5[%c0_12, %c0_13] : memref<16x1xf32, #tpu.memory_space<vmem>>, vector<16x1xf32>
    %33 = vector.broadcast %32 : vector<16x1xf32> to vector<16x256xf32>
    %34 = arith.addf %31, %33 : vector<16x256xf32>
    %cst_14 = arith.constant 0.000000e+00 : f32
    %35 = vector.broadcast %cst_14 : f32 to vector<16x256xf32>
    %36 = arith.maximumf %34, %35 : vector<16x256xf32>
    %c0_15 = arith.constant 0 : index
    %c0_16 = arith.constant 0 : index
    %37 = vector.load %arg6[%c0_15, %c0_16] : memref<32x16xf32, #tpu.memory_space<vmem>>, vector<32x16xf32>
    %cst_17 = arith.constant dense<0.000000e+00> : vector<32x256xf32>
    %38 = tpu.matmul %37, %36, %cst_17 {dimension_numbers = #tpu.dot_dimension_numbers<[1], [0], [0], [1], [0, 0, 1, 1], [], []>} : vector<32x16xf32>, vector<16x256xf32>, vector<32x256xf32> -> vector<32x256xf32>
    %39 = vector.extract_strided_slice %38 {offsets = [0, 0], sizes = [32, 64], strides = [1, 1]} : vector<32x256xf32> to vector<32x64xf32>
    %40 = vector.extract_strided_slice %38 {offsets = [0, 64], sizes = [32, 64], strides = [1, 1]} : vector<32x256xf32> to vector<32x64xf32>
    %41 = arith.maximumf %39, %40 : vector<32x64xf32>
    %42 = vector.extract_strided_slice %38 {offsets = [0, 128], sizes = [32, 64], strides = [1, 1]} : vector<32x256xf32> to vector<32x64xf32>
    %43 = vector.extract_strided_slice %38 {offsets = [0, 192], sizes = [32, 64], strides = [1, 1]} : vector<32x256xf32> to vector<32x64xf32>
    %44 = arith.maximumf %42, %43 : vector<32x64xf32>
    %45 = arith.maximumf %41, %44 : vector<32x64xf32>
    %c0_18 = arith.constant 0 : index
    %c0_19 = arith.constant 0 : index
    %46 = vector.load %arg7[%c0_18, %c0_19] : memref<32x1xf32, #tpu.memory_space<vmem>>, vector<32x1xf32>
    %47 = vector.broadcast %46 : vector<32x1xf32> to vector<32x64xf32>
    %48 = arith.addf %45, %47 : vector<32x64xf32>
    %cst_20 = arith.constant 0.000000e+00 : f32
    %49 = vector.broadcast %cst_20 : f32 to vector<32x64xf32>
    %50 = arith.maximumf %48, %49 : vector<32x64xf32>
    %c0_21 = arith.constant 0 : index
    %c0_22 = arith.constant 0 : index
    %51 = vector.load %arg8[%c0_21, %c0_22] : memref<64x32xf32, #tpu.memory_space<vmem>>, vector<64x32xf32>
    %cst_23 = arith.constant dense<0.000000e+00> : vector<64x64xf32>
    %52 = tpu.matmul %51, %50, %cst_23 {dimension_numbers = #tpu.dot_dimension_numbers<[1], [0], [0], [1], [0, 0, 1, 1], [], []>} : vector<64x32xf32>, vector<32x64xf32>, vector<64x64xf32> -> vector<64x64xf32>
    %53 = vector.extract_strided_slice %52 {offsets = [0, 0], sizes = [64, 16], strides = [1, 1]} : vector<64x64xf32> to vector<64x16xf32>
    %54 = vector.extract_strided_slice %52 {offsets = [0, 16], sizes = [64, 16], strides = [1, 1]} : vector<64x64xf32> to vector<64x16xf32>
    %55 = arith.maximumf %53, %54 : vector<64x16xf32>
    %56 = vector.extract_strided_slice %52 {offsets = [0, 32], sizes = [64, 16], strides = [1, 1]} : vector<64x64xf32> to vector<64x16xf32>
    %57 = vector.extract_strided_slice %52 {offsets = [0, 48], sizes = [64, 16], strides = [1, 1]} : vector<64x64xf32> to vector<64x16xf32>
    %58 = arith.maximumf %56, %57 : vector<64x16xf32>
    %59 = arith.maximumf %55, %58 : vector<64x16xf32>
    %c0_24 = arith.constant 0 : index
    %c0_25 = arith.constant 0 : index
    %60 = vector.load %arg9[%c0_24, %c0_25] : memref<64x1xf32, #tpu.memory_space<vmem>>, vector<64x1xf32>
    %61 = vector.broadcast %60 : vector<64x1xf32> to vector<64x16xf32>
    %62 = arith.addf %59, %61 : vector<64x16xf32>
    %cst_26 = arith.constant 0.000000e+00 : f32
    %63 = vector.broadcast %cst_26 : f32 to vector<64x16xf32>
    %64 = arith.maximumf %62, %63 : vector<64x16xf32>
    %c0_27 = arith.constant 0 : index
    %c0_28 = arith.constant 0 : index
    %c0_29 = arith.constant 0 : index
    %65 = vector.load %arg10[%c0_27, %c0_28, %c0_29] : memref<1x64x16xf32, #tpu.memory_space<vmem>>, vector<1x64x16xf32>
    %66 = vector.shape_cast %65 : vector<1x64x16xf32> to vector<64x16xf32>
    %67 = vector.shape_cast %64 : vector<64x16xf32> to vector<1x64x16xf32>
    tpu.vector_store %arg10[%c0_27, %c0_28, %c0_29], %67 {strides = array<i32>} : memref<1x64x16xf32, #tpu.memory_space<vmem>>, vector<1x64x16xf32>,
    return
  }
  func.func @transform_0(%arg0: i32) -> (i32, i32, i32) {
    %c0_i32 = arith.constant 0 : i32
    %c0_i32_0 = arith.constant 0 : i32
    %c0_i32_1 = arith.constant 0 : i32
    return %arg0, %c0_i32, %c0_i32_0 : i32, i32, i32
  }
  func.func @transform_1(%arg0: i32) -> (i32, i32) {
    %c0_i32 = arith.constant 0 : i32
    %c0_i32_0 = arith.constant 0 : i32
    %c0_i32_1 = arith.constant 0 : i32
    return %c0_i32, %c0_i32_0 : i32, i32
  }
  func.func @transform_2(%arg0: i32) -> (i32, i32) {
    %c0_i32 = arith.constant 0 : i32
    %c0_i32_0 = arith.constant 0 : i32
    %c0_i32_1 = arith.constant 0 : i32
    return %c0_i32, %c0_i32_0 : i32, i32
  }
  func.func @transform_3(%arg0: i32) -> (i32, i32) {
    %c0_i32 = arith.constant 0 : i32
    %c0_i32_0 = arith.constant 0 : i32
    %c0_i32_1 = arith.constant 0 : i32
    return %c0_i32, %c0_i32_0 : i32, i32
  }
  func.func @transform_4(%arg0: i32) -> (i32, i32) {
    %c0_i32 = arith.constant 0 : i32
    %c0_i32_0 = arith.constant 0 : i32
    %c0_i32_1 = arith.constant 0 : i32
    return %c0_i32, %c0_i32_0 : i32, i32
  }
  func.func @transform_5(%arg0: i32) -> (i32, i32) {
    %c0_i32 = arith.constant 0 : i32
    %c0_i32_0 = arith.constant 0 : i32
    %c0_i32_1 = arith.constant 0 : i32
    return %c0_i32, %c0_i32_0 : i32, i32
  }
  func.func @transform_6(%arg0: i32) -> (i32, i32) {
    %c0_i32 = arith.constant 0 : i32
    %c0_i32_0 = arith.constant 0 : i32
    %c0_i32_1 = arith.constant 0 : i32
    return %c0_i32, %c0_i32_0 : i32, i32
  }
  func.func @transform_7(%arg0: i32) -> (i32, i32) {
    %c0_i32 = arith.constant 0 : i32
    %c0_i32_0 = arith.constant 0 : i32
    %c0_i32_1 = arith.constant 0 : i32
    return %c0_i32, %c0_i32_0 : i32, i32
  }
  func.func @transform_8(%arg0: i32) -> (i32, i32) {
    %c0_i32 = arith.constant 0 : i32
    %c0_i32_0 = arith.constant 0 : i32
    %c0_i32_1 = arith.constant 0 : i32
    return %c0_i32, %c0_i32_0 : i32, i32
  }
  func.func @transform_9(%arg0: i32) -> (i32, i32, i32) {
    %c0_i32 = arith.constant 0 : i32
    %c0_i32_0 = arith.constant 0 : i32
    %c0_i32_1 = arith.constant 0 : i32
    return %arg0, %c0_i32, %c0_i32_0 : i32, i32, i32
  }
}

module attributes {stable_mosaic.version = 11 : i64} {
  func.func @_fc_stack_kernel(%arg0: memref<2x1024xf32, #tpu.memory_space<vmem>>, %arg1: memref<1024x384xbf16, #tpu.memory_space<vmem>>, %arg2: memref<1x384xf32, #tpu.memory_space<vmem>>, %arg3: memref<384x256xbf16, #tpu.memory_space<vmem>>, %arg4: memref<1x256xf32, #tpu.memory_space<vmem>>, %arg5: memref<1x256xf32, #tpu.memory_space<vmem>>, %arg6: memref<1x1xf32, #tpu.memory_space<vmem>>, %arg7: memref<2x1xf32, #tpu.memory_space<vmem>>) attributes {dimension_semantics = [], scalar_prefetch = 0 : i64, scratch_operands = 0 : i64, tpu.core_type = #tpu.core_type<tc>} {
    %c0 = arith.constant 0 : index
    %c0_0 = arith.constant 0 : index
    %0 = vector.load %arg0[%c0, %c0_0] : memref<2x1024xf32, #tpu.memory_space<vmem>>, vector<2x1024xf32>
    %1 = arith.truncf %0 : vector<2x1024xf32> to vector<2x1024xbf16>
    %c0_1 = arith.constant 0 : index
    %c0_2 = arith.constant 0 : index
    %2 = vector.load %arg1[%c0_1, %c0_2] : memref<1024x384xbf16, #tpu.memory_space<vmem>>, vector<1024x384xbf16>
    %cst = arith.constant dense<0.000000e+00> : vector<2x384xf32>
    %3 = tpu.matmul %1, %2, %cst {dimension_numbers = #tpu.dot_dimension_numbers<[1], [0], [0], [1], [0, 0, 1, 1], [], []>} : vector<2x1024xbf16>, vector<1024x384xbf16>, vector<2x384xf32> -> vector<2x384xf32>
    %c0_3 = arith.constant 0 : index
    %c0_4 = arith.constant 0 : index
    %4 = vector.load %arg2[%c0_3, %c0_4] : memref<1x384xf32, #tpu.memory_space<vmem>>, vector<1x384xf32>
    %5 = vector.broadcast %4 : vector<1x384xf32> to vector<2x384xf32>
    %6 = arith.addf %3, %5 : vector<2x384xf32>
    %cst_5 = arith.constant 0.000000e+00 : f32
    %7 = vector.broadcast %cst_5 : f32 to vector<2x384xf32>
    %8 = arith.maximumf %6, %7 : vector<2x384xf32>
    %9 = arith.truncf %8 : vector<2x384xf32> to vector<2x384xbf16>
    %c0_6 = arith.constant 0 : index
    %c0_7 = arith.constant 0 : index
    %10 = vector.load %arg3[%c0_6, %c0_7] : memref<384x256xbf16, #tpu.memory_space<vmem>>, vector<384x256xbf16>
    %cst_8 = arith.constant dense<0.000000e+00> : vector<2x256xf32>
    %11 = tpu.matmul %9, %10, %cst_8 {dimension_numbers = #tpu.dot_dimension_numbers<[1], [0], [0], [1], [0, 0, 1, 1], [], []>} : vector<2x384xbf16>, vector<384x256xbf16>, vector<2x256xf32> -> vector<2x256xf32>
    %c0_9 = arith.constant 0 : index
    %c0_10 = arith.constant 0 : index
    %12 = vector.load %arg4[%c0_9, %c0_10] : memref<1x256xf32, #tpu.memory_space<vmem>>, vector<1x256xf32>
    %13 = vector.broadcast %12 : vector<1x256xf32> to vector<2x256xf32>
    %14 = arith.addf %11, %13 : vector<2x256xf32>
    %cst_11 = arith.constant 0.000000e+00 : f32
    %15 = vector.broadcast %cst_11 : f32 to vector<2x256xf32>
    %16 = arith.maximumf %14, %15 : vector<2x256xf32>
    %c0_12 = arith.constant 0 : index
    %c0_13 = arith.constant 0 : index
    %17 = vector.load %arg5[%c0_12, %c0_13] : memref<1x256xf32, #tpu.memory_space<vmem>>, vector<1x256xf32>
    %18 = vector.broadcast %17 : vector<1x256xf32> to vector<2x256xf32>
    %19 = arith.mulf %16, %18 : vector<2x256xf32>
    %cst_14 = arith.constant dense<0.000000e+00> : vector<2xf32>
    %20 = vector.multi_reduction <add>, %19, %cst_14 [1] : vector<2x256xf32> to vector<2xf32>
    %21 = vector.shape_cast %20 : vector<2xf32> to vector<2x1xf32>
    %c0_15 = arith.constant 0 : index
    %c0_16 = arith.constant 0 : index
    %22 = vector.load %arg6[%c0_15, %c0_16] : memref<1x1xf32, #tpu.memory_space<vmem>>, vector<1x1xf32>
    %23 = vector.broadcast %22 : vector<1x1xf32> to vector<2x1xf32>
    %24 = arith.addf %21, %23 : vector<2x1xf32>
    %25 = arith.negf %24 : vector<2x1xf32>
    %26 = math.exp %25 : vector<2x1xf32>
    %cst_17 = arith.constant 1.000000e+00 : f32
    %27 = vector.broadcast %cst_17 : f32 to vector<2x1xf32>
    %28 = arith.addf %27, %26 : vector<2x1xf32>
    %29 = arith.divf %27, %28 : vector<2x1xf32>
    %c0_18 = arith.constant 0 : index
    %c0_19 = arith.constant 0 : index
    %30 = vector.load %arg7[%c0_18, %c0_19] : memref<2x1xf32, #tpu.memory_space<vmem>>, vector<2x1xf32>
    tpu.vector_store %arg7[%c0_18, %c0_19], %29 {strides = array<i32>} : memref<2x1xf32, #tpu.memory_space<vmem>>, vector<2x1xf32>,
    return
  }
}

</mosaic_0001>

<bundles_post_ra>
// kernel: net_forward.2
= control target key start
LH: loop header
LB: loop body
LE: loop exit
PB: predicated region body
PF: predicated region fallthrough
CT: control target
= control target key end

     0   :  { %s1547_s30 = smov 0   ;;  %s1728_s0 = inlined_call_operand.vmem [shape: f32[2,4,1024], index: 0, kind: input, shape index: {}]   ;;  %s1729_s1 = inlined_call_operand.vmem [shape: f32[8,1], index: 1, kind: input, shape index: {}]   ;;  %s1730_s2 = inlined_call_operand.vmem [shape: f32[8,1], index: 2, kind: input, shape index: {}]   ;;  %s1731_s3 = inlined_call_operand.vmem [shape: f32[16,8], index: 3, kind: input, shape index: {}]   ;;  %s1732_s4 = inlined_call_operand.vmem [shape: f32[16,1], index: 4, kind: input, shape index: {}]   ;;  %s1733_s5 = inlined_call_operand.vmem [shape: f32[32,16], index: 5, kind: input, shape index: {}]   ;;  %s1734_s6 = inlined_call_operand.vmem [shape: f32[32,1], index: 6, kind: input, shape index: {}]   ;;  %s1735_s7 = inlined_call_operand.vmem [shape: f32[64,32], index: 7, kind: input, shape index: {}]   ;;  %s1736_s8 = inlined_call_operand.vmem [shape: f32[64,1], index: 8, kind: input, shape index: {}]   ;;  %s1737_s9 = inlined_call_operand.vmem [shape: f32[2,64,16], index: 9, kind: output, shape index: {}]  }
   0x1 LB: > { %s1388_s10 = sadd.s32 4294967295, %s1490_s30   ;;  %p1392_p0 = scmp.ge.s32.totalorder %s1490_s30, 1  ;;  %s1490_s30 = sphi %s1547_s30, %s19_s30  }
   0x2   : > { %p287_p1 = scmp.lt.s32.totalorder %s1490_s30, 3 }
   0x4   : > { %p288_p2 = pnand %p1392_p0, %p287_p1 }
   0x5   : > { %v490_v0 = vld [vmem:[%s1730_s2] sm:$0xff] (!%p288_p2)  ;;  %v1492_v2 = vmov (!%p288_p2), 0   ;;  %v842_v6 = vld [vmem:[%s1732_s4 + $0x8] sm:$0xff] (!%p288_p2)  ;;  %v1013_v7 = vld [vmem:[%s1734_s6 + $0x10] sm:$0xff] (!%p288_p2)  ;;  %v1493_v9 = vmov (!%p288_p2), 0.0   ;;  %p323_p3 = scmp.lt.s32.totalorder (!%p288_p2), %s1388_s10, 1 }
   0x6   : > { %291 = sbr.rel (%p288_p2) target bundleno = 1209 (0x4b9), region = 56  ;;  %v462_v1 = vld [vmem:[%s1729_s1] sm:$0xff] (!%p288_p2)  ;;  %1479 = vset.pattern.permute.xlu1 (!%p288_p2), %v1492_v2  ;;  %1478 = vset.pattern.permute.xlu0 (!%p288_p2), %v1492_v2  ;;  %v1012_v8 = vld [vmem:[%s1734_s6 + $0x8] sm:$0xff] (!%p288_p2)  ;;  %v1014_v10 = vld [vmem:[%s1734_s6 + $0x18] sm:$0xff] (!%p288_p2)  ;;  %vm349_vm1 = vcmask (!%p288_p2), 1043456   ;;  %vm514_vm3 = vcmask (!%p288_p2), 64512  }
   0x7   : > { %vm463_vm0 = vcmp.ge.f32.partialorder (!%p288_p2), %v462_v1, 0.0  ;;  %493 = vperm.xlu1 (!%p288_p2), %1479, %v490_v0   ;;  %v841_v4 = vld [vmem:[%s1732_s4] sm:$0xff] (!%p288_p2)  ;;  %585 = vmatprep.mubr.f32.mxu0 (!%p288_p2), %v1493_v9  ;;  %vm865_vm4 = vcmask (!%p288_p2), 130048   ;;  %s1494_s24 = smov (!%p288_p2), 64   ;;  %vm1051_vm5 = vcmask (!%p288_p2), 261120   ;;  %s1495_s22 = smov (!%p288_p2), 112  }
   0x8   : > { %v464_v3 = vsel (!%p288_p2), %vm463_vm0, 1, %v1492_v2  ;;  %v1011_v5 = vld [vmem:[%s1734_s6] sm:$0xff] (!%p288_p2)  ;;  %662 = vmatprep.mubr.f32.mxu1 (!%p288_p2), %v1493_v9  ;;  %s1496_s20 = smov (!%p288_p2), 96  }
   0x9   : > { %466 = vperm.xlu0 (!%p288_p2), %1478, %v464_v3  }
   0xb   : > { %845 = vperm.xlu1 (!%p288_p2), %1479, %v841_v4  }
   0xd   : > { %479 = vperm.xlu0 %1478, %v462_v1   ;;  %s1739_s10 = smov (!%p323_p3, %s1388_s10), 1 }
   0xe   : > { %s1419_s27 = sshll.u32 %s1739_s10, 5  ;;  %s1420_s21 = sshll.u32 %s1739_s10, 6 }
   0xf   : > { %1017 = vperm.xlu1 %1479, %v1011_v5   ;;  %s327_s11 = scalar_lea.vmem %s1728_s0, %s1419_s27 }
  0x10   : > { %v333_v11 = vld [vmem:[%s327_s11] sm:$0xff]  ;;  %v334_v13 = vld [vmem:[%s327_s11 + $0x8] sm:$0xff]  ;;  %v335_v14 = vld [vmem:[%s327_s11 + $0x10] sm:$0xff] }
  0x11   : > { %850 = vperm.xlu0 %1478, %v842_v6   ;;  %v341_v12 = vcombine.high %v333_v11, %v333_v11  ;;  %v336_v15 = vld [vmem:[%s327_s11 + $0x18] sm:$0xff]  ;;  %v342_v16 = vcombine.high %v334_v13, %v334_v13  ;;  %v350_v17 = vsel %vm349_vm1, %v333_v11, -inf  ;;  %v406_v18 = vsel %vm349_vm1, %v333_v11, inf }
  0x12   : > { %v343_v21 = vcombine.high %v335_v14, %v335_v14  ;;  %v344_v22 = vcombine.high %v336_v15, %v336_v15  ;;  %v351_v23 = vrot.slane %v350_v17, 4  ;;  %v407_v24 = vrot.slane %v406_v18, 4 }
  0x13   : > { %1027 = vperm.xlu1 %1479, %v1013_v7   ;;  %v357_v19 = vsel %vm349_vm1, %v341_v12, -inf  ;;  %v413_v20 = vsel %vm349_vm1, %v341_v12, inf  ;;  %v364_v25 = vsel %vm349_vm1, %v334_v13, -inf  ;;  %v420_v26 = vsel %vm349_vm1, %v334_v13, inf }
  0x14   : > { %v358_v27 = vrot.slane %v357_v19, 4  ;;  %v414_v28 = vrot.slane %v413_v20, 4  ;;  %v371_v29 = vsel %vm349_vm1, %v342_v16, -inf  ;;  %v427_v30 = vsel %vm349_vm1, %v342_v16, inf }
  0x15   : > { %1022 = vperm.xlu0 %1478, %v1012_v8   ;;  %v385_v31 = vsel %vm349_vm1, %v343_v21, -inf  ;;  %v441_v32 = vsel %vm349_vm1, %v343_v21, inf  ;;  %v399_v33 = vsel %vm349_vm1, %v344_v22, -inf  ;;  %v378_v34 = vsel %vm349_vm1, %v335_v14, -inf }
  0x16   : > { %v455_v35 = vsel %vm349_vm1, %v344_v22, inf  ;;  %v434_v36 = vsel %vm349_vm1, %v335_v14, inf  ;;  %v392_v37 = vsel %vm349_vm1, %v336_v15, -inf  ;;  %v448_v38 = vsel %vm349_vm1, %v336_v15, inf }
  0x17   : > { %v372_v39 = vrot.slane %v371_v29, 4  ;;  %v428_v40 = vrot.slane %v427_v30, 4  ;;  %v365_v41 = vrot.slane %v364_v25, 4  ;;  %v421_v42 = vrot.slane %v420_v26, 4 }
  0x18   : > { %v386_v43 = vrot.slane %v385_v31, 4  ;;  %v442_v44 = vrot.slane %v441_v32, 4  ;;  %v400_v45 = vrot.slane %v399_v33, 4  ;;  %v379_v46 = vrot.slane %v378_v34, 4 }
  0x19   : > { %1032 = vperm.xlu0 %1478, %v1014_v10   ;;  %v456_v47 = vrot.slane %v455_v35, 4  ;;  %v435_v48 = vrot.slane %v434_v36, 4  ;;  %v393_v49 = vrot.slane %v392_v37, 4  ;;  %v449_v50 = vrot.slane %v448_v38, 4 }
  0x1a   : > { %v359_v51 = vmax.f32 %v357_v19, %v358_v27  ;;  %v415_v52 = vmin.f32 %v413_v20, %v414_v28  ;;  %v352_v53 = vmax.f32 %v350_v17, %v351_v23  ;;  %v408_v54 = vmin.f32 %v406_v18, %v407_v24 }
  0x1b   : > { %v373_v55 = vmax.f32 %v371_v29, %v372_v39  ;;  %v429_v56 = vmin.f32 %v427_v30, %v428_v40  ;;  %v366_v57 = vmax.f32 %v364_v25, %v365_v41  ;;  %v422_v58 = vmin.f32 %v420_v26, %v421_v42 }
  0x1c   : > { %v387_v59 = vmax.f32 %v385_v31, %v386_v43  ;;  %v443_v60 = vmin.f32 %v441_v32, %v442_v44  ;;  %v401_v61 = vmax.f32 %v399_v33, %v400_v45  ;;  %v380_v62 = vmax.f32 %v378_v34, %v379_v46 }
  0x1d   : > { %v457_v63 = vmin.f32 %v455_v35, %v456_v47  ;;  %v436_v0 = vmin.f32 %v434_v36, %v435_v48  ;;  %v394_v1 = vmax.f32 %v392_v37, %v393_v49  ;;  %v450_v2 = vmin.f32 %v448_v38, %v449_v50 }
  0x1e   : > { %v360_v3 = vrot.slane %v359_v51, 2  ;;  %v416_v4 = vrot.slane %v415_v52, 2  ;;  %v353_v5 = vrot.slane %v352_v53, 2  ;;  %v409_v6 = vrot.slane %v408_v54, 2 }
  0x1f   : > { %v374_v7 = vrot.slane %v373_v55, 2  ;;  %v430_v8 = vrot.slane %v429_v56, 2  ;;  %v367_v10 = vrot.slane %v366_v57, 2  ;;  %v423_v11 = vrot.slane %v422_v58, 2 }
  0x20   : > { %v388_v12 = vrot.slane %v387_v59, 2  ;;  %v444_v13 = vrot.slane %v443_v60, 2  ;;  %v402_v14 = vrot.slane %v401_v61, 2  ;;  %v381_v15 = vrot.slane %v380_v62, 2 }
  0x21   : > { %v458_v16 = vrot.slane %v457_v63, 2  ;;  %v437_v17 = vrot.slane %v436_v0, 2  ;;  %v395_v18 = vrot.slane %v394_v1, 2  ;;  %v451_v19 = vrot.slane %v450_v2, 2 }
  0x22   : > { %v361_v20 = vmax.f32 %v359_v51, %v360_v3  ;;  %v417_v21 = vmin.f32 %v415_v52, %v416_v4  ;;  %v354_v22 = vmax.f32 %v352_v53, %v353_v5  ;;  %v410_v23 = vmin.f32 %v408_v54, %v409_v6 }
  0x23   : > { %v375_v24 = vmax.f32 %v373_v55, %v374_v7  ;;  %v431_v25 = vmin.f32 %v429_v56, %v430_v8  ;;  %v368_v26 = vmax.f32 %v366_v57, %v367_v10  ;;  %v424_v27 = vmin.f32 %v422_v58, %v423_v11 }
  0x24   : > { %v389_v28 = vmax.f32 %v387_v59, %v388_v12  ;;  %v445_v29 = vmin.f32 %v443_v60, %v444_v13  ;;  %v403_v30 = vmax.f32 %v401_v61, %v402_v14  ;;  %v382_v31 = vmax.f32 %v380_v62, %v381_v15 }
  0x25   : > { %v459_v32 = vmin.f32 %v457_v63, %v458_v16  ;;  %v438_v33 = vmin.f32 %v436_v0, %v437_v17  ;;  %v396_v34 = vmax.f32 %v394_v1, %v395_v18  ;;  %v452_v35 = vmin.f32 %v450_v2, %v451_v19 }
  0x26   : > { %v362_v36 = vrot.slane %v361_v20, 1  ;;  %v418_v37 = vrot.slane %v417_v21, 1  ;;  %v355_v38 = vrot.slane %v354_v22, 1  ;;  %v411_v39 = vrot.slane %v410_v23, 1 }
  0x27   : > { %v376_v40 = vrot.slane %v375_v24, 1  ;;  %v432_v41 = vrot.slane %v431_v25, 1  ;;  %v369_v42 = vrot.slane %v368_v26, 1  ;;  %v425_v43 = vrot.slane %v424_v27, 1 }
  0x28   : > { %v390_v44 = vrot.slane %v389_v28, 1  ;;  %v446_v45 = vrot.slane %v445_v29, 1  ;;  %v404_v46 = vrot.slane %v403_v30, 1  ;;  %v383_v47 = vrot.slane %v382_v31, 1 }
  0x29   : > { %v460_v48 = vrot.slane %v459_v32, 1  ;;  %v439_v49 = vrot.slane %v438_v33, 1  ;;  %v397_v50 = vrot.slane %v396_v34, 1  ;;  %v453_v51 = vrot.slane %v452_v35, 1 }
  0x2a   : > { %v363_v52 = vmax.f32 %v361_v20, %v362_v36  ;;  %v419_v53 = vmin.f32 %v417_v21, %v418_v37  ;;  %v356_v54 = vmax.f32 %v354_v22, %v355_v38  ;;  %v412_v55 = vmin.f32 %v410_v23, %v411_v39  ;;  %v512_v36 = vld [vmem:[%s1731_s3] sm:$0xff] }
  0x2b   : > { %v377_v56 = vmax.f32 %v375_v24, %v376_v40  ;;  %v433_v57 = vmin.f32 %v431_v25, %v432_v41  ;;  %v370_v58 = vmax.f32 %v368_v26, %v369_v42  ;;  %v426_v59 = vmin.f32 %v424_v27, %v425_v43  ;;  %v513_v41 = vld [vmem:[%s1731_s3 + $0x8] sm:$0xff] }
  0x2c   : > { %v391_v60 = vmax.f32 %v389_v28, %v390_v44  ;;  %v447_v61 = vmin.f32 %v445_v29, %v446_v45  ;;  %v405_v62 = vmax.f32 %v403_v30, %v404_v46  ;;  %v384_v63 = vmax.f32 %v382_v31, %v383_v47 }
  0x2d   : > { %v461_v1 = vmin.f32 %v459_v32, %v460_v48  ;;  %v440_v2 = vmin.f32 %v438_v33, %v439_v49  ;;  %v398_v3 = vmax.f32 %v396_v34, %v397_v50  ;;  %v454_v4 = vmin.f32 %v452_v35, %v453_v51 }
  0x86   : > { %v494_v19 = vpop.permute.xlu1 %493 }
  0x88   : > { %v467_v0 = vpop.permute.xlu0 %466 }
  0x89   : > { %vm468_vm2 = vcmp.eq.s32.totalorder %v467_v0, 1 }
  0x8a   : > { %v470_v5 = vsel %vm468_vm2, %v363_v52, %v419_v53  ;;  %v472_v6 = vsel %vm468_vm2, %v377_v56, %v433_v57  ;;  %v469_v7 = vsel %vm468_vm2, %v356_v54, %v412_v55  ;;  %v471_v8 = vsel %vm468_vm2, %v370_v58, %v426_v59 }
  0x8b   : > { %v474_v11 = vsel %vm468_vm2, %v391_v60, %v447_v61  ;;  %v476_v12 = vsel %vm468_vm2, %v405_v62, %v461_v1  ;;  %v473_v13 = vsel %vm468_vm2, %v384_v63, %v440_v2  ;;  %v475_v14 = vsel %vm468_vm2, %v398_v3, %v454_v4  ;;  %v846_v3 = vpop.permute.xlu1 %845 }
  0x8c   : > { %v480_v10 = vpop.permute.xlu0 %479 }
  0x8d   : > { %v483_v15 = vmul.f32 %v480_v10, %v470_v5  ;;  %v485_v16 = vmul.f32 %v480_v10, %v472_v6  ;;  %v482_v17 = vmul.f32 %v480_v10, %v469_v7  ;;  %v484_v18 = vmul.f32 %v480_v10, %v471_v8 }
  0x8e   : > { %v487_v20 = vmul.f32 %v480_v10, %v474_v11  ;;  %v489_v21 = vmul.f32 %v480_v10, %v476_v12  ;;  %v486_v22 = vmul.f32 %v480_v10, %v473_v13  ;;  %v488_v23 = vmul.f32 %v480_v10, %v475_v14 }
  0x8f   : > { %v497_v24 = vadd.f32 %v494_v19, %v483_v15  ;;  %v499_v25 = vadd.f32 %v494_v19, %v485_v16  ;;  %v496_v26 = vadd.f32 %v494_v19, %v482_v17  ;;  %v498_v27 = vadd.f32 %v494_v19, %v484_v18 }
  0x90   : > { %v501_v28 = vadd.f32 %v494_v19, %v487_v20  ;;  %v503_v29 = vadd.f32 %v494_v19, %v489_v21  ;;  %v500_v30 = vadd.f32 %v494_v19, %v486_v22  ;;  %v502_v31 = vadd.f32 %v494_v19, %v488_v23  ;;  %v851_v7 = vpop.permute.xlu0 %850  ;;  %v861_v19 = vld [vmem:[%s1733_s5] sm:$0xff]  ;;  %v862_v20 = vld [vmem:[%s1733_s5 + $0x8] sm:$0xff]  ;;  %v863_v21 = vld [vmem:[%s1733_s5 + $0x10] sm:$0xff] }
  0x91   : > { %v505_v32 = vmax.f32 %v497_v24, 0.0  ;;  %v507_v33 = vmax.f32 %v499_v25, 0.0  ;;  %v504_v34 = vmax.f32 %v496_v26, 0.0  ;;  %v506_v35 = vmax.f32 %v498_v27, 0.0  ;;  %v864_v22 = vld [vmem:[%s1733_s5 + $0x18] sm:$0xff] }
  0x92   : > { %v509_v37 = vmax.f32 %v501_v28, 0.0  ;;  %v511_v38 = vmax.f32 %v503_v29, 0.0  ;;  %v508_v39 = vmax.f32 %v500_v30, 0.0  ;;  %v510_v40 = vmax.f32 %v502_v31, 0.0  ;;  %v1043_v30 = vld [vmem:[%s1735_s7] sm:$0xff]  ;;  %v1018_v31 = vpop.permute.xlu1 %1017 }
  0x93   : > { %521 = vmatprep.subr.mxu0 %v505_v32  ;;  %598 = vmatprep.subr.mxu1 %v507_v33 }
  0x94   : > { %522 = vmatpush1.msra.mxu0 %v504_v34  ;;  %599 = vmatpush1.msra.mxu1 %v506_v35  ;;  %v1023_v32 = vpop.permute.xlu0 %1022 }
  0x95   : > { %1397 = vmatmul.mubr.msk.f32.vlgmr.msra.gmra.mrb[0].mxu0 %vm514_vm3, %v512_v36  ;;  %1399 = vmatmul.mubr.msk.f32.vlgmr.msra.gmra.mrb[0].mxu1 %vm514_vm3, %v512_v36 }
  0x96   : > { %675 = vmatprep.subr.mxu0 %v509_v37  ;;  %752 = vmatprep.subr.mxu1 %v511_v38  ;;  %v1028_v33 = vpop.permute.xlu1 %1027 }
  0x97   : > { %676 = vmatpush1.msra.mxu0 %v508_v39  ;;  %753 = vmatpush1.msra.mxu1 %v510_v40 }
  0x98   : > { %591 = vmatprep.mubr.f32.mxu0 %v1493_v9  ;;  %668 = vmatprep.mubr.f32.mxu1 %v1493_v9  ;;  %v1033_v34 = vpop.permute.xlu0 %1032 }
  0x99   : > { %1398 = vmatmul.mubr.msk.f32.gmra.mrb[2].mxu0 %vm514_vm3, %v513_v41  ;;  %1400 = vmatmul.mubr.msk.f32.gmra.mrb[2].mxu1 %vm514_vm3, %v513_v41 }
  0x9a   : > { %739 = vmatprep.mubr.f32.mxu0 %v1493_v9  ;;  %816 = vmatprep.mubr.f32.mxu1 %v1493_v9 }
  0x9d   : > { %1401 = vmatmul.mubr.msk.f32.vlgmr.msra.gmra.mrb[4].mxu0 %vm514_vm3, %v512_v36  ;;  %1403 = vmatmul.mubr.msk.f32.vlgmr.msra.gmra.mrb[4].mxu1 %vm514_vm3, %v512_v36 }
  0x9e   : > { %745 = vmatprep.mubr.f32.mxu0 %v1493_v9  ;;  %822 = vmatprep.mubr.f32.mxu1 %v1493_v9 }
  0xa1   : > { %1402 = vmatmul.mubr.msk.f32.gmra.mrb[6].mxu0 %vm514_vm3, %v513_v41  ;;  %1404 = vmatmul.mubr.msk.f32.gmra.mrb[6].mxu1 %vm514_vm3, %v513_v41 }
  0xa2   : > { %942 = vmatprep.mubr.f32.mxu0 %v1493_v9  ;;  %1441 = vmatprep.mubr.msk.f32.mxu1 %vm1051_vm5, %v1043_v30 }
 0x168   : > { %v587_v42 = vpop.f32.mrb[0].mxu0  ;;  %v664_v43 = vpop.f32.mrb[0].mxu1 }
 0x169   : > { %v829_v44 = vmax.f32 %v587_v42, %v664_v43  ;;  %v589_v45 = vpop.f32.mrb[1].mxu0  ;;  %v666_v46 = vpop.f32.mrb[1].mxu1 }
 0x16a   : > { %v830_v47 = vmax.f32 %v589_v45, %v666_v46 }
 0x16c   : > { %v593_v48 = vpop.f32.mrb[2].mxu0  ;;  %v670_v49 = vpop.f32.mrb[2].mxu1 }
 0x16d   : > { %v831_v50 = vmax.f32 %v593_v48, %v670_v49  ;;  %v595_v51 = vpop.f32.mrb[3].mxu0  ;;  %v672_v52 = vpop.f32.mrb[3].mxu1 }
 0x16e   : > { %v832_v53 = vmax.f32 %v595_v51, %v672_v52 }
 0x170   : > { %v741_v54 = vpop.f32.mrb[4].mxu0  ;;  %v818_v55 = vpop.f32.mrb[4].mxu1 }
 0x171   : > { %v833_v56 = vmax.f32 %v741_v54, %v818_v55  ;;  %v743_v57 = vpop.f32.mrb[5].mxu0  ;;  %v820_v58 = vpop.f32.mrb[5].mxu1 }
 0x172   : > { %v834_v59 = vmax.f32 %v743_v57, %v820_v58 }
 0x173   : > { %v837_v60 = vmax.f32 %v829_v44, %v833_v56 }
 0x174   : > { %v838_v61 = vmax.f32 %v830_v47, %v834_v59  ;;  %v747_v62 = vpop.f32.mrb[6].mxu0  ;;  %v824_v63 = vpop.f32.mrb[6].mxu1 }
 0x175   : > { %v835_v0 = vmax.f32 %v747_v62, %v824_v63  ;;  %v749_v1 = vpop.f32.mrb[7].mxu0  ;;  %v826_v2 = vpop.f32.mrb[7].mxu1  ;;  %v853_v5 = vadd.f32 %v846_v3, %v837_v60 }
 0x176   : > { %v836_v4 = vmax.f32 %v749_v1, %v826_v2  ;;  %v854_v8 = vadd.f32 %v846_v3, %v838_v61  ;;  %v1044_v1 = vld [vmem:[%s1735_s7 + $0x8] sm:$0xff]  ;;  %v1045_v2 = vld [vmem:[%s1735_s7 + $0x10] sm:$0xff]  ;;  %v1046_v3 = vld [vmem:[%s1735_s7 + $0x18] sm:$0xff] }
 0x177   : > { %v839_v6 = vmax.f32 %v831_v50, %v835_v0  ;;  %v857_v13 = vmax.f32 %v853_v5, 0.0  ;;  %v1048_v5 = vld [vmem:[%s1735_s7 + $0x28] sm:$0xff] }
 0x178   : > { %v840_v10 = vmax.f32 %v832_v53, %v836_v4  ;;  %v858_v15 = vmax.f32 %v854_v8, 0.0  ;;  %v1047_v4 = vld [vmem:[%s1735_s7 + $0x20] sm:$0xff] }
 0x179   : > { %v855_v11 = vadd.f32 %v851_v7, %v839_v6  ;;  %v1049_v6 = vld [vmem:[%s1735_s7 + $0x30] sm:$0xff] }
 0x17a   : > { %v856_v12 = vadd.f32 %v851_v7, %v840_v10  ;;  %v1050_v7 = vld [vmem:[%s1735_s7 + $0x38] sm:$0xff] }
 0x17b   : > { %v859_v14 = vmax.f32 %v855_v11, 0.0 }
 0x17c   : > { %v860_v16 = vmax.f32 %v856_v12, 0.0 }
 0x17d   : > { %v1455_v17 = vpack.c.bf16 %v859_v14, %v857_v13 }
 0x17e   : > { %v1453_v18 = vpack.c.bf16 %v860_v16, %v858_v15 }
 0x180   : > { %1454 = vmatprep.subr.bf16.mxu0 %v1453_v18  ;;  %v1261_v18 = vld [vmem:[%s1736_s8] sm:$0xff] }
 0x181   : > { %1456 = vmatpush1.bf16.msra.mxu0 %v1455_v17  ;;  %v1262_v17 = vld [vmem:[%s1736_s8 + $0x8] sm:$0xff] }
 0x184   : > { %1405 = vmatmul.mubr.msk.f32.vlgmr.msra.gmra.mrb[8].mxu0 %vm865_vm4, %v861_v19  ;;  %v1264_v19 = vld [vmem:[%s1736_s8 + $0x18] sm:$0xff] }
 0x185   : > { %948 = vmatprep.mubr.f32.mxu0 %v1493_v9 }
 0x188   : > { %1406 = vmatmul.mubr.msk.f32.gmra.mrb[10].mxu0 %vm865_vm4, %v862_v20  ;;  %v1263_v20 = vld [vmem:[%s1736_s8 + $0x10] sm:$0xff] }
 0x189   : > { %954 = vmatprep.mubr.f32.mxu0 %v1493_v9 }
 0x18c   : > { %1407 = vmatmul.mubr.msk.f32.gmra.mrb[12].mxu0 %vm865_vm4, %v863_v21  ;;  %v1266_v21 = vld [vmem:[%s1736_s8 + $0x28] sm:$0xff] }
 0x18d   : > { %960 = vmatprep.mubr.f32.mxu0 %v1493_v9 }
 0x190   : > { %1408 = vmatmul.mubr.msk.f32.gmra.mrb[14].mxu0 %vm865_vm4, %v864_v22  ;;  %v1265_v22 = vld [vmem:[%s1736_s8 + $0x20] sm:$0xff] }
 0x257   : > { %v944_v23 = vpop.f32.mrb[8].mxu0 }
 0x258   : > { %971 = vrot.lane.b32.xlu1 %v944_v23, %s1494_s24  ;;  %v946_v24 = vpop.f32.mrb[9].mxu0 }
 0x25b   : > { %v950_v25 = vpop.f32.mrb[10].mxu0 }
 0x25c   : > { %991 = vrot.lane.b32.xlu1 %v946_v24, %s1494_s24  ;;  %973 = vrot.lane.b32.xlu0 %v950_v25, %s1494_s24  ;;  %v952_v26 = vpop.f32.mrb[11].mxu0 }
 0x25f   : > { %v956_v27 = vpop.f32.mrb[12].mxu0 }
 0x260   : > { %993 = vrot.lane.b32.xlu0 %v952_v26, %s1494_s24  ;;  %975 = vrot.lane.b32.xlu1 %v956_v27, %s1494_s24  ;;  %v958_v28 = vpop.f32.mrb[13].mxu0 }
 0x263   : > { %v962_v29 = vpop.f32.mrb[14].mxu0 }
 0x264   : > { %995 = vrot.lane.b32.xlu1 %v958_v28, %s1494_s24  ;;  %977 = vrot.lane.b32.xlu0 %v962_v29, %s1494_s24  ;;  %v964_v9 = vpop.f32.mrb[15].mxu0 }
 0x268   : > { %997 = vrot.lane.b32.xlu0 %v964_v9, %s1494_s24  ;;  %s1707_s24 = scalar_lea.vmem %s1737_s9, %s1420_s21 }
 0x2ca   : > { %v972_v35 = vpop.permute.xlu1 %971 }
 0x2cb   : > { %v983_v38 = vmax.f32 %v944_v23, %v972_v35  ;;  %v1268_v23 = vld [vmem:[%s1736_s8 + $0x38] sm:$0xff] }
 0x2ce   : > { %v992_v36 = vpop.permute.xlu1 %991  ;;  %v974_v37 = vpop.permute.xlu0 %973 }
 0x2cf   : > { %v1003_v39 = vmax.f32 %v946_v24, %v992_v36  ;;  %v984_v43 = vmax.f32 %v950_v25, %v974_v37  ;;  %v1267_v24 = vld [vmem:[%s1736_s8 + $0x30] sm:$0xff] }
 0x2d1   : > { %v1007_v40 = vmax.f32 %v983_v38, %v1003_v39 }
 0x2d2   : > { %v994_v41 = vpop.permute.xlu0 %993  ;;  %v976_v42 = vpop.permute.xlu1 %975 }
 0x2d3   : > { %v1004_v44 = vmax.f32 %v952_v26, %v994_v41  ;;  %v1035_v45 = vadd.f32 %v1018_v31, %v1007_v40  ;;  %v985_v50 = vmax.f32 %v956_v27, %v976_v42 }
 0x2d5   : > { %v1008_v46 = vmax.f32 %v984_v43, %v1004_v44  ;;  %v1039_v52 = vmax.f32 %v1035_v45, 0.0 }
 0x2d6   : > { %v996_v47 = vpop.permute.xlu1 %995  ;;  %v978_v48 = vpop.permute.xlu0 %977 }
 0x2d7   : > { %v1036_v49 = vadd.f32 %v1023_v32, %v1008_v46  ;;  %v1005_v51 = vmax.f32 %v958_v28, %v996_v47  ;;  %v986_v56 = vmax.f32 %v962_v29, %v978_v48 }
 0x2d9   : > { %v1040_v53 = vmax.f32 %v1036_v49, 0.0  ;;  %v1009_v54 = vmax.f32 %v985_v50, %v1005_v51 }
 0x2da   : > { %v998_v55 = vpop.permute.xlu0 %997 }
 0x2db   : > { %v1006_v57 = vmax.f32 %v964_v9, %v998_v55  ;;  %v1457_v58 = vpack.c.bf16 %v1040_v53, %v1039_v52  ;;  %v1037_v59 = vadd.f32 %v1028_v33, %v1009_v54 }
 0x2dd   : > { %v1010_v60 = vmax.f32 %v986_v56, %v1006_v57  ;;  %1458 = vmatprep.subr.bf16.mxu1 %v1457_v58  ;;  %v1041_v62 = vmax.f32 %v1037_v59, 0.0 }
 0x2de   : > { %1460 = vmatpush3.bf16.msra.mxu1 %v1457_v58 }
 0x2df   : > { %v1038_v61 = vadd.f32 %v1033_v34, %v1010_v60 }
 0x2e1   : > { %v1042_v63 = vmax.f32 %v1038_v61, 0.0 }
 0x2e3   : > { %v1461_v0 = vpack.c.bf16 %v1042_v63, %v1041_v62 }
 0x2e5   : > { %1462 = vmatprep.subr.bf16.mxu1 %v1461_v0 }
 0x2e6   : > { %1464 = vmatpush3.bf16.msra.mxu1 %v1461_v0 }
 0x2e9   : > { %1442 = vmatmul.mubr.msk.f32.vlgmr.msra.gmra.mrb[8].mxu1 %vm1051_vm5, %v1044_v1 }
 0x2ea   : > { %1444 = vmatprep.mubr.msk.f32.mxu1 %vm1051_vm5, %v1045_v2 }
 0x2ed   : > { %1445 = vmatmul.mubr.msk.f32.gmra.mrb[10].mxu1 %vm1051_vm5, %v1046_v3 }
 0x2ee   : > { %1447 = vmatprep.mubr.msk.f32.mxu1 %vm1051_vm5, %v1047_v4 }
 0x2f1   : > { %1448 = vmatmul.mubr.msk.f32.gmra.mrb[12].mxu1 %vm1051_vm5, %v1048_v5 }
 0x2f2   : > { %1450 = vmatprep.mubr.msk.f32.mxu1 %vm1051_vm5, %v1049_v6 }
 0x2f5   : > { %1451 = vmatmul.mubr.msk.f32.gmra.mrb[14].mxu1 %vm1051_vm5, %v1050_v7 }
 0x3bc   : > { %v1443_v8 = vpop.f32.mrb[8].mxu1 }
 0x3bd   : > { %1191 = vrot.lane.b32.xlu0 %v1443_v8, %s1495_s22  ;;  %v1142_v10 = vpop.f32.mrb[9].mxu1 }
 0x3be   : > { %1189 = vrot.lane.b32.xlu1 %v1142_v10, %s1495_s22 }
 0x3c0   : > { %v1446_v11 = vpop.f32.mrb[10].mxu1 }
 0x3c1   : > { %1195 = vrot.lane.b32.xlu0 %v1446_v11, %s1495_s22  ;;  %v1152_v12 = vpop.f32.mrb[11].mxu1 }
 0x3c2   : > { %1193 = vrot.lane.b32.xlu1 %v1152_v12, %s1495_s22 }
 0x3c4   : > { %v1449_v13 = vpop.f32.mrb[12].mxu1 }
 0x3c5   : > { %1199 = vrot.lane.b32.xlu0 %v1449_v13, %s1495_s22  ;;  %v1162_v14 = vpop.f32.mrb[13].mxu1 }
 0x3c6   : > { %1197 = vrot.lane.b32.xlu1 %v1162_v14, %s1495_s22 }
 0x3c8   : > { %v1452_v15 = vpop.f32.mrb[14].mxu1 }
 0x3c9   : > { %1203 = vrot.lane.b32.xlu0 %v1452_v15, %s1495_s22  ;;  %v1172_v16 = vpop.f32.mrb[15].mxu1 }
 0x3ca   : > { %1201 = vrot.lane.b32.xlu1 %v1172_v16, %s1495_s22 }
 0x3cd   : > { %1276 = vperm.xlu0 %1478, %v1262_v17  }
 0x3ce   : > { %1271 = vperm.xlu1 %1479, %v1261_v18  }
 0x3d1   : > { %1286 = vperm.xlu0 %1478, %v1264_v19  }
 0x3d2   : > { %1281 = vperm.xlu1 %1479, %v1263_v20  }
 0x3d5   : > { %1296 = vperm.xlu0 %1478, %v1266_v21  }
 0x3d6   : > { %1291 = vperm.xlu1 %1479, %v1265_v22  }
 0x3d9   : > { %1306 = vperm.xlu0 %1478, %v1268_v23  }
 0x3da   : > { %1301 = vperm.xlu1 %1479, %v1267_v24  }
 0x42f   : > { %v1192_v25 = vpop.permute.xlu0 %1191 }
 0x430   : > { %v1214_v26 = vmax.f32 %v1443_v8, %v1192_v25  ;;  %v1190_v27 = vpop.permute.xlu1 %1189 }
 0x431   : > { %v1213_v28 = vmax.f32 %v1142_v10, %v1190_v27 }
 0x432   : > { %1231 = vrot.lane.b32.xlu0 %v1214_v26, %s1496_s20 }
 0x433   : > { %v1196_v29 = vpop.permute.xlu0 %1195  ;;  %1229 = vrot.lane.b32.xlu1 %v1213_v28, %s1496_s20 }
 0x434   : > { %v1216_v9 = vmax.f32 %v1446_v11, %v1196_v29  ;;  %v1194_v30 = vpop.permute.xlu1 %1193 }
 0x435   : > { %v1215_v31 = vmax.f32 %v1152_v12, %v1194_v30 }
 0x436   : > { %1235 = vrot.lane.b32.xlu0 %v1216_v9, %s1496_s20 }
 0x437   : > { %v1200_v32 = vpop.permute.xlu0 %1199  ;;  %1233 = vrot.lane.b32.xlu1 %v1215_v31, %s1496_s20 }
 0x438   : > { %v1218_v33 = vmax.f32 %v1449_v13, %v1200_v32  ;;  %v1198_v34 = vpop.permute.xlu1 %1197 }
 0x439   : > { %v1217_v35 = vmax.f32 %v1162_v14, %v1198_v34 }
 0x43a   : > { %1239 = vrot.lane.b32.xlu0 %v1218_v33, %s1496_s20 }
 0x43b   : > { %v1204_v36 = vpop.permute.xlu0 %1203  ;;  %1237 = vrot.lane.b32.xlu1 %v1217_v35, %s1496_s20 }
 0x43c   : > { %v1220_v37 = vmax.f32 %v1452_v15, %v1204_v36  ;;  %v1202_v38 = vpop.permute.xlu1 %1201 }
 0x43d   : > { %v1219_v39 = vmax.f32 %v1172_v16, %v1202_v38 }
 0x43e   : > { %1243 = vrot.lane.b32.xlu0 %v1220_v37, %s1496_s20 }
 0x43f   : > { %1241 = vrot.lane.b32.xlu1 %v1219_v39, %s1496_s20 }
 0x44c   : > { %v1277_v40 = vpop.permute.xlu0 %1276 }
 0x44d   : > { %v1272_v41 = vpop.permute.xlu1 %1271 }
 0x450   : > { %v1287_v42 = vpop.permute.xlu0 %1286 }
 0x451   : > { %v1282_v43 = vpop.permute.xlu1 %1281 }
 0x454   : > { %v1297_v44 = vpop.permute.xlu0 %1296 }
 0x455   : > { %v1292_v45 = vpop.permute.xlu1 %1291 }
 0x458   : > { %v1307_v46 = vpop.permute.xlu0 %1306 }
 0x459   : > { %v1302_v47 = vpop.permute.xlu1 %1301 }
 0x4a4   : > { %v1232_v48 = vpop.permute.xlu0 %1231 }
 0x4a5   : > { %v1254_v49 = vmax.f32 %v1214_v26, %v1232_v48  ;;  %v1230_v50 = vpop.permute.xlu1 %1229 }
 0x4a6   : > { %v1253_v51 = vmax.f32 %v1213_v28, %v1230_v50 }
 0x4a7   : > { %v1310_v52 = vadd.f32 %v1277_v40, %v1254_v49 }
 0x4a8   : > { %v1309_v53 = vadd.f32 %v1272_v41, %v1253_v51  ;;  %v1236_v54 = vpop.permute.xlu0 %1235 }
 0x4a9   : > { %v1318_v55 = vmax.f32 %v1310_v52, 0.0  ;;  %v1256_v56 = vmax.f32 %v1216_v9, %v1236_v54  ;;  %v1234_v57 = vpop.permute.xlu1 %1233 }
 0x4aa   : > { %v1317_v58 = vmax.f32 %v1309_v53, 0.0  ;;  %v1255_v59 = vmax.f32 %v1215_v31, %v1234_v57 }
 0x4ab   : > { %1326 = vst.msk [vmem:[%s1707_s24 + $0x8] sm:$0xff] %vm865_vm4, %v1318_v55  ;;  %v1312_v60 = vadd.f32 %v1287_v42, %v1256_v56 }
 0x4ac   : > { %1325 = vst.msk [vmem:[%s1707_s24] sm:$0xff] %vm865_vm4, %v1317_v58  ;;  %v1311_v61 = vadd.f32 %v1282_v43, %v1255_v59  ;;  %v1240_v62 = vpop.permute.xlu0 %1239 }
 0x4ad   : > { %v1320_v63 = vmax.f32 %v1312_v60, 0.0  ;;  %v1258_v0 = vmax.f32 %v1218_v33, %v1240_v62  ;;  %v1238_v1 = vpop.permute.xlu1 %1237 }
 0x4ae   : > { %v1319_v2 = vmax.f32 %v1311_v61, 0.0  ;;  %v1257_v3 = vmax.f32 %v1217_v35, %v1238_v1 }
 0x4af   : > { %1328 = vst.msk [vmem:[%s1707_s24 + $0x18] sm:$0xff] %vm865_vm4, %v1320_v63  ;;  %v1314_v4 = vadd.f32 %v1297_v44, %v1258_v0 }
 0x4b0   : > { %1327 = vst.msk [vmem:[%s1707_s24 + $0x10] sm:$0xff] %vm865_vm4, %v1319_v2  ;;  %v1313_v5 = vadd.f32 %v1292_v45, %v1257_v3  ;;  %v1244_v6 = vpop.permute.xlu0 %1243 }
 0x4b1   : > { %v1322_v7 = vmax.f32 %v1314_v4, 0.0  ;;  %v1260_v8 = vmax.f32 %v1220_v37, %v1244_v6  ;;  %v1242_v10 = vpop.permute.xlu1 %1241 }
 0x4b2   : > { %v1321_v11 = vmax.f32 %v1313_v5, 0.0  ;;  %v1259_v12 = vmax.f32 %v1219_v39, %v1242_v10 }
 0x4b3   : > { %1330 = vst.msk [vmem:[%s1707_s24 + $0x28] sm:$0xff] %vm865_vm4, %v1322_v7  ;;  %v1316_v13 = vadd.f32 %v1307_v46, %v1260_v8 }
 0x4b4   : > { %1329 = vst.msk [vmem:[%s1707_s24 + $0x20] sm:$0xff] %vm865_vm4, %v1321_v11  ;;  %v1315_v14 = vadd.f32 %v1302_v47, %v1259_v12 }
 0x4b5   : > { %v1324_v15 = vmax.f32 %v1316_v13, 0.0 }
 0x4b6   : > { %v1323_v16 = vmax.f32 %v1315_v14, 0.0 }
 0x4b7   : > { %1332 = vst.msk [vmem:[%s1707_s24 + $0x38] sm:$0xff] %vm865_vm4, %v1324_v15 }
 0x4b8   : > { %1331 = vst.msk [vmem:[%s1707_s24 + $0x30] sm:$0xff] %vm865_vm4, %v1323_v16 }
 0x4b9 PF: > { %s19_s30 = sadd.s32 1, %s1490_s30  }
 0x4ba   : > { %p16_p4 = scmp.ge.s32.totalorder %s19_s30, 4  }
 0x4bc   :  { %18 = sbr.rel (!%p16_p4) target bundleno = 1 (0x1), region = 86 }

// kernel: net_forward.3
= control target key start
LH: loop header
LB: loop body
LE: loop exit
PB: predicated region body
PF: predicated region fallthrough
CT: control target
= control target key end

     0   :  { %v2820_v7 = vmov 1983009808   ;;  %v37_v9 = vlaneseq  ;;  %vm2108_vm0 = vcmask 1041408   ;;  %vm2128_vm1 = vcmask 1024   ;;  %s3679_s1 = inlined_call_operand.vmem [shape: bf16[1024,384], index: 1, kind: input, shape index: {}]   ;;  %s3680_s0 = inlined_call_operand.vmem [shape: f32[2,1024], index: 0, kind: input, shape index: {}]   ;;  %s3681_s3 = inlined_call_operand.vmem [shape: bf16[384,256], index: 3, kind: input, shape index: {}]   ;;  %s3682_s2 = inlined_call_operand.vmem [shape: f32[1,384], index: 2, kind: input, shape index: {}]   ;;  %s3683_s6 = inlined_call_operand.<no memory space> [shape: f32[1,1], index: 6, kind: input, shape index: {}]   ;;  %s3684_s4 = inlined_call_operand.vmem [shape: f32[1,256], index: 4, kind: input, shape index: {}]   ;;  %s3685_s5 = inlined_call_operand.vmem [shape: f32[1,256], index: 5, kind: input, shape index: {}]   ;;  %s3686_s7 = inlined_call_operand.vmem [shape: f32[2,1], index: 7, kind: output, shape index: {}]  }
   0x1   :  { %v2486_v0 = vld [vmem:[%s3679_s1 + $0x4] ss:$12 sps:$4 sm:$0xff]   ;;  %v2488_v1 = vld [vmem:[%s3679_s1] ss:$12 sps:$4 sm:$0xff]   ;;  %v2489_v2 = vld [vmem:[%s3679_s1 + $0x1c] ss:$12 sps:$4 sm:$0xff]   ;;  %v35_v8 = vunpack.c.l.s4 %v2820_v7 }
   0x2   :  { %1380 = vmatprep.subr.bf16.mxu0 %v2486_v0  ;;  %v2491_v3 = vld [vmem:[%s3679_s1 + $0x18] ss:$12 sps:$4 sm:$0xff]   ;;  %v2492_v4 = vld [vmem:[%s3679_s1 + $0x34] ss:$12 sps:$4 sm:$0xff]   ;;  %v2494_v5 = vld [vmem:[%s3679_s1 + $0x30] ss:$12 sps:$4 sm:$0xff]  }
   0x3   :  { %1381 = vmatpush1.bf16.msra.mxu0 %v2488_v1  ;;  %v2495_v6 = vld [vmem:[%s3679_s1 + $0x4c] ss:$12 sps:$4 sm:$0xff]   ;;  %v2497_v10 = vld [vmem:[%s3679_s1 + $0x48] ss:$12 sps:$4 sm:$0xff]   ;;  %v2498_v11 = vld [vmem:[%s3679_s1 + $0x64] ss:$12 sps:$4 sm:$0xff]   ;;  %v36_v12 = vunpack.c.0.s8 %v35_v8 }
   0x4   :  { %1382 = vmatprep.subr.bf16.mxu0 %v2489_v2  ;;  %v2889_v13 = vshrl.u32 %v37_v9, 7  ;;  %v2500_v14 = vld [vmem:[%s3679_s1 + $0x60] ss:$12 sps:$4 sm:$0xff]   ;;  %v2501_v15 = vld [vmem:[%s3679_s1 + $0x7c] ss:$12 sps:$4 sm:$0xff]  }
   0x5   :  { %v2503_v17 = vld [vmem:[%s3679_s1 + $0x78] ss:$12 sps:$4 sm:$0xff]   ;;  %v2504_v18 = vld [vmem:[%s3679_s1 + $0x94] ss:$12 sps:$4 sm:$0xff]   ;;  %v2506_v21 = vld [vmem:[%s3679_s1 + $0x90] ss:$12 sps:$4 sm:$0xff]  }
   0x6   :  { %v2898_v16 = vsub.s32 %v36_v12, %v2889_v13  ;;  %v2909_v19 = vld [vmem:[%s3680_s0] sm:$0xff]  ;;  %v2507_v22 = vld [vmem:[%s3679_s1 + $0xac] ss:$12 sps:$4 sm:$0xff]   ;;  %v2509_v24 = vld [vmem:[%s3679_s1 + $0xa8] ss:$12 sps:$4 sm:$0xff]  }
   0x7   :  { %1383 = vmatpush1.bf16.msra.mxu0 %v2491_v3  ;;  %v2542_v25 = vld [vmem:[%s3679_s1 + $0xc8] ss:$12 sps:$4 sm:$0xff]   ;;  %v2510_v28 = vld [vmem:[%s3679_s1 + $0xc4] ss:$12 sps:$4 sm:$0xff]   ;;  %v2547_v30 = vld [vmem:[%s3679_s1 + $0xe0] ss:$12 sps:$4 sm:$0xff]   ;;  %v33_v51 = vcombine.high %v2909_v19, %v2909_v19 }
   0x8   :  { %1384 = vmatprep.subr.bf16.mxu0 %v2492_v4  ;;  %v2913_v20 = vrot.slane %v2909_v19, %v2898_v16  ;;  %v2543_v27 = vld [vmem:[%s3679_s1 + $0x8] ss:$12 sps:$4 sm:$0xff]   ;;  %2376 = vmatprep.subr.bf16.mxu1 %v2542_v25  ;;  %v2548_v31 = vld [vmem:[%s3679_s1 + $0x20] ss:$12 sps:$4 sm:$0xff]   ;;  %v2552_v34 = vld [vmem:[%s3679_s1 + $0xf8] ss:$12 sps:$4 sm:$0xff]  }
   0x9   :  { %v2938_v29 = vld [vmem:[%s3680_s0 + $0x8] sm:$0xff]  ;;  %2377 = vmatpush3.bf16.msra.mxu1 %v2543_v27  ;;  %v2553_v36 = vld [vmem:[%s3679_s1 + $0x38] ss:$12 sps:$4 sm:$0xff]   ;;  %v2557_v38 = vld [vmem:[%s3679_s1 + $0x110] ss:$12 sps:$4 sm:$0xff]   ;;  %v3019_v56 = vrot.slane %v33_v51, %v2898_v16 }
   0xa   :  { %v48_v23 = vcombine.high %v2913_v20, %v2913_v20  ;;  %v2512_v32 = vld [vmem:[%s3679_s1 + $0xc0] ss:$12 sps:$4 sm:$0xff]   ;;  %2378 = vmatprep.subr.bf16.mxu1 %v2547_v30  ;;  %v2513_v33 = vld [vmem:[%s3679_s1 + $0xdc] ss:$12 sps:$4 sm:$0xff]   ;;  %v2957_v35 = vrot.slane %v2938_v29, %v2898_v16  ;;  %v2515_v37 = vld [vmem:[%s3679_s1 + $0xd8] ss:$12 sps:$4 sm:$0xff]   ;;  %v75_v0 = vpack.c.bf16 %v2913_v20, %v2913_v20  ;;  %v50_v3 = vcombine.high %v2938_v29, %v2938_v29 }
   0xb   :  { %1385 = vmatpush1.bf16.msra.mxu0 %v2494_v5  ;;  %v2516_v39 = vld [vmem:[%s3679_s1 + $0xf4] ss:$12 sps:$4 sm:$0xff]   ;;  %v2558_v40 = vld [vmem:[%s3679_s1 + $0x50] ss:$12 sps:$4 sm:$0xff]   ;;  %v2519_v43 = vld [vmem:[%s3679_s1 + $0x10c] ss:$12 sps:$4 sm:$0xff]   ;;  %v49_v61 = vcombine.high %v3019_v56, %v3019_v56 }
   0xc   :  { %1386 = vmatprep.subr.bf16.mxu0 %v2495_v6  ;;  %v76_v26 = vpack.c.bf16 %v48_v23, %v48_v23  ;;  %v2562_v41 = vld [vmem:[%s3679_s1 + $0x128] ss:$12 sps:$4 sm:$0xff]   ;;  %v2518_v42 = vld [vmem:[%s3679_s1 + $0xf0] ss:$12 sps:$4 sm:$0xff]   ;;  %v2567_v45 = vld [vmem:[%s3679_s1 + $0x140] ss:$12 sps:$4 sm:$0xff]   ;;  %v3064_v9 = vrot.slane %v50_v3, %v2898_v16 }
   0xd   :  { %2379 = vmatpush3.bf16.msra.mxu1 %v2548_v31  ;;  %v2563_v44 = vld [vmem:[%s3679_s1 + $0x68] ss:$12 sps:$4 sm:$0xff]   ;;  %v2522_v47 = vld [vmem:[%s3679_s1 + $0x124] ss:$12 sps:$4 sm:$0xff]   ;;  %v2568_v48 = vld [vmem:[%s3679_s1 + $0x80] ss:$12 sps:$4 sm:$0xff]   ;;  %v78_v4 = vpack.c.bf16 %v49_v61, %v49_v61 }
   0xe   :  { %1412 = vmatprep.mubr.bf16.mxu0 %v76_v26  ;;  %1576 = vmatprep.mubr.bf16.mxu1 %v76_v26  ;;  %v2521_v46 = vld [vmem:[%s3679_s1 + $0x108] ss:$12 sps:$4 sm:$0xff]   ;;  %v2572_v49 = vld [vmem:[%s3679_s1 + $0x158] ss:$12 sps:$4 sm:$0xff]   ;;  %v2524_v50 = vld [vmem:[%s3679_s1 + $0x120] ss:$12 sps:$4 sm:$0xff]  }
   0xf   :  { %1387 = vmatpush1.bf16.msra.mxu0 %v2497_v10  ;;  %2380 = vmatprep.subr.bf16.mxu1 %v2552_v34  ;;  %v2525_v52 = vld [vmem:[%s3679_s1 + $0x13c] ss:$12 sps:$4 sm:$0xff]   ;;  %v2573_v53 = vld [vmem:[%s3679_s1 + $0x98] ss:$12 sps:$4 sm:$0xff]   ;;  %v2528_v57 = vld [vmem:[%s3679_s1 + $0x154] ss:$12 sps:$4 sm:$0xff]  }
  0x10   :  { %1388 = vmatprep.subr.bf16.mxu0 %v2498_v11  ;;  %v2577_v54 = vld [vmem:[%s3679_s1 + $0x170] ss:$12 sps:$4 sm:$0xff]   ;;  %v2527_v55 = vld [vmem:[%s3679_s1 + $0x138] ss:$12 sps:$4 sm:$0xff]   ;;  %v2582_v59 = vld [vmem:[%s3679_s1 + $0x248] ss:$12 sps:$4 sm:$0xff]  }
  0x11   :  { %2381 = vmatpush3.bf16.msra.mxu1 %v2553_v36  ;;  %v2578_v58 = vld [vmem:[%s3679_s1 + $0xb0] ss:$12 sps:$4 sm:$0xff]   ;;  %v2531_v62 = vld [vmem:[%s3679_s1 + $0x16c] ss:$12 sps:$4 sm:$0xff]   ;;  %v2583_v63 = vld [vmem:[%s3679_s1 + $0x188] ss:$12 sps:$4 sm:$0xff]  }
  0x12   :  { %2382 = vmatprep.subr.bf16.mxu1 %v2557_v38  ;;  %v2530_v60 = vld [vmem:[%s3679_s1 + $0x150] ss:$12 sps:$4 sm:$0xff]   ;;  %v2587_v1 = vld [vmem:[%s3679_s1 + $0x260] ss:$12 sps:$4 sm:$0xff]   ;;  %v2533_v2 = vld [vmem:[%s3679_s1 + $0x168] ss:$12 sps:$4 sm:$0xff]  }
  0x13   :  { %1389 = vmatpush1.bf16.msra.mxu0 %v2500_v14  ;;  %v2538_v5 = vld [vmem:[%s3679_s1 + $0x184] ss:$12 sps:$4 sm:$0xff]   ;;  %v2588_v6 = vld [vmem:[%s3679_s1 + $0x1a0] ss:$12 sps:$4 sm:$0xff]   ;;  %v2541_v10 = vld [vmem:[%s3679_s1 + $0x19c] ss:$12 sps:$4 sm:$0xff]  }
  0x14   :  { %1390 = vmatprep.subr.bf16.mxu0 %v2501_v15  ;;  %v2592_v7 = vld [vmem:[%s3679_s1 + $0x278] ss:$12 sps:$4 sm:$0xff]   ;;  %v2536_v8 = vld [vmem:[%s3679_s1 + $0x180] ss:$12 sps:$4 sm:$0xff]   ;;  %v2597_v12 = vld [vmem:[%s3679_s1 + $0x290] ss:$12 sps:$4 sm:$0xff]  }
  0x15   :  { %2383 = vmatpush3.bf16.msra.mxu1 %v2558_v40  ;;  %v2593_v11 = vld [vmem:[%s3679_s1 + $0x1b8] ss:$12 sps:$4 sm:$0xff]   ;;  %v2546_v15 = vld [vmem:[%s3679_s1 + $0x1b4] ss:$12 sps:$4 sm:$0xff]   ;;  %v2598_v16 = vld [vmem:[%s3679_s1 + $0x1d0] ss:$12 sps:$4 sm:$0xff]   ;;  %v3150_v40 = vpack.c.bf16 %v3019_v56, %v3019_v56 }
  0x16   :  { %2384 = vmatprep.subr.bf16.mxu1 %v2562_v41  ;;  %v2539_v14 = vld [vmem:[%s3679_s1 + $0x198] ss:$12 sps:$4 sm:$0xff]   ;;  %v2603_v20 = vld [vmem:[%s3679_s1 + $0x1e8] ss:$12 sps:$4 sm:$0xff]   ;;  %v2554_v26 = vld [vmem:[%s3679_s1 + $0x1e0] ss:$12 sps:$4 sm:$0xff]  }
  0x17   :  { %1391 = vmatpush1.bf16.msra.mxu0 %v2503_v17  ;;  %v2602_v17 = vld [vmem:[%s3679_s1 + $0x2a8] ss:$12 sps:$4 sm:$0xff]   ;;  %v2551_v19 = vld [vmem:[%s3679_s1 + $0x1cc] ss:$12 sps:$4 sm:$0xff]   ;;  %v2556_v23 = vld [vmem:[%s3679_s1 + $0x1e4] ss:$12 sps:$4 sm:$0xff]  }
  0x18   :  { %1392 = vmatprep.subr.bf16.mxu0 %v2504_v18  ;;  %v2544_v18 = vld [vmem:[%s3679_s1 + $0x1b0] ss:$12 sps:$4 sm:$0xff]   ;;  %v2612_v25 = vld [vmem:[%s3679_s1 + $0x2d8] ss:$12 sps:$4 sm:$0xff]   ;;  %v2566_v31 = vld [vmem:[%s3679_s1 + $0x214] ss:$12 sps:$4 sm:$0xff]  }
  0x19   :  { %2385 = vmatpush3.bf16.msra.mxu1 %v2563_v44  ;;  %v2561_v27 = vld [vmem:[%s3679_s1 + $0x1fc] ss:$12 sps:$4 sm:$0xff]   ;;  %v2559_v30 = vld [vmem:[%s3679_s1 + $0x1f8] ss:$12 sps:$4 sm:$0xff]   ;;  %v2627_v41 = vld [vmem:[%s3679_s1 + $0x3e0] ss:$12 sps:$4 sm:$0xff]  }
  0x1a   :  { %2386 = vmatprep.subr.bf16.mxu1 %v2567_v45  ;;  %v2617_v29 = vld [vmem:[%s3679_s1 + $0x2f0] ss:$12 sps:$4 sm:$0xff]   ;;  %v2622_v34 = vld [vmem:[%s3679_s1 + $0x3c8] ss:$12 sps:$4 sm:$0xff]   ;;  %v2628_v44 = vld [vmem:[%s3679_s1 + $0x320] ss:$12 sps:$4 sm:$0xff]  }
  0x1b   :  { %1393 = vmatpush1.bf16.msra.mxu0 %v2506_v21  ;;  %v2607_v21 = vld [vmem:[%s3679_s1 + $0x2c0] ss:$12 sps:$4 sm:$0xff]   ;;  %v2564_v36 = vld [vmem:[%s3679_s1 + $0x210] ss:$12 sps:$4 sm:$0xff]   ;;  %v2623_v38 = vld [vmem:[%s3679_s1 + $0x308] ss:$12 sps:$4 sm:$0xff]  }
  0x1c   :  { %1394 = vmatprep.subr.bf16.mxu0 %v2507_v22  ;;  %v2549_v22 = vld [vmem:[%s3679_s1 + $0x1c8] ss:$12 sps:$4 sm:$0xff]   ;;  %v2632_v45 = vld [vmem:[%s3679_s1 + $0x3f8] ss:$12 sps:$4 sm:$0xff]  }
  0x1d   :  { %2387 = vmatpush3.bf16.msra.mxu1 %v2568_v48  ;;  %v2633_v48 = vld [vmem:[%s3679_s1 + $0x338] ss:$12 sps:$4 sm:$0xff]   ;;  %v2586_v51 = vld [vmem:[%s3679_s1 + $0x274] ss:$12 sps:$4 sm:$0xff]  }
  0x1e   :  { %2388 = vmatprep.subr.bf16.mxu1 %v2572_v49  ;;  %v2637_v49 = vld [vmem:[%s3679_s1 + $0x410] ss:$12 sps:$4 sm:$0xff]   ;;  %v2643_v56 = vld [vmem:[%s3679_s1 + $0x368] ss:$12 sps:$4 sm:$0xff]   ;;  %v2652_v61 = vld [vmem:[%s3679_s1 + $0x458] ss:$12 sps:$4 sm:$0xff]  }
  0x1f   :  { %1395 = vmatpush1.bf16.msra.mxu0 %v2509_v24  ;;  %v2608_v24 = vld [vmem:[%s3679_s1 + $0x200] ss:$12 sps:$4 sm:$0xff]  }
  0x20   :  { %1396 = vmatprep.subr.bf16.mxu0 %v2510_v28  ;;  %v2613_v28 = vld [vmem:[%s3679_s1 + $0x218] ss:$12 sps:$4 sm:$0xff]   ;;  %v2606_v3 = vld [vmem:[%s3679_s1 + $0x2d4] ss:$12 sps:$4 sm:$0xff]  }
  0x21   :  { %2389 = vmatpush3.bf16.msra.mxu1 %v2573_v53  ;;  %v2642_v53 = vld [vmem:[%s3679_s1 + $0x428] ss:$12 sps:$4 sm:$0xff]  }
  0x22   :  { %2390 = vmatprep.subr.bf16.mxu1 %v2577_v54  ;;  %v2584_v54 = vld [vmem:[%s3679_s1 + $0x270] ss:$12 sps:$4 sm:$0xff]  }
  0x23   :  { %1397 = vmatpush1.bf16.msra.mxu0 %v2512_v32  ;;  %v2618_v32 = vld [vmem:[%s3679_s1 + $0x230] ss:$12 sps:$4 sm:$0xff]  }
  0x24   :  { %1398 = vmatprep.subr.bf16.mxu0 %v2513_v33  ;;  %v65_v33 = vcombine.high %v2957_v35, %v2957_v35 }
  0x25   :  { %2391 = vmatpush3.bf16.msra.mxu1 %v2578_v58  ;;  %v2589_v58 = vld [vmem:[%s3679_s1 + $0x288] ss:$12 sps:$4 sm:$0xff]  }
  0x26   :  { %2398 = vmatprep.subr.bf16.mxu1 %v2582_v59  ;;  %v2596_v59 = vld [vmem:[%s3679_s1 + $0x2a4] ss:$12 sps:$4 sm:$0xff]  }
  0x27   :  { %1399 = vmatpush1.bf16.msra.mxu0 %v2515_v37  ;;  %v2571_v37 = vld [vmem:[%s3679_s1 + $0x22c] ss:$12 sps:$4 sm:$0xff]  }
  0x28   :  { %1400 = vmatprep.subr.bf16.mxu0 %v2516_v39  ;;  %1577 = vmatmul.mubr.bf16.vlgmr.msra.gmra.mrb[0].mxu1 %v75_v0  ;;  %v3146_v39 = vpack.c.bf16 %v65_v33, %v65_v33  ;;  %v2692_v33 = vld [vmem:[%s3679_s1 + $0x5d8] ss:$12 sps:$4 sm:$0xff]  }
  0x29   :  { %2399 = vmatpush3.bf16.msra.mxu1 %v2583_v63  ;;  %1616 = vmatprep.mubr.bf16.mxu1 %v78_v4  ;;  %v2601_v63 = vld [vmem:[%s3679_s1 + $0x2bc] ss:$12 sps:$4 sm:$0xff]  }
  0x2a   :  { %2400 = vmatprep.subr.bf16.mxu1 %v2587_v1  ;;  %v2657_v1 = vld [vmem:[%s3679_s1 + $0x470] ss:$12 sps:$4 sm:$0xff]  }
  0x2b   :  { %1401 = vmatpush1.bf16.msra.mxu0 %v2518_v42  ;;  %v2569_v42 = vld [vmem:[%s3679_s1 + $0x228] ss:$12 sps:$4 sm:$0xff]  }
  0x2c   :  { %1402 = vmatprep.subr.bf16.mxu0 %v2519_v43  ;;  %v2576_v43 = vld [vmem:[%s3679_s1 + $0x244] ss:$12 sps:$4 sm:$0xff]  }
  0x2d   :  { %2401 = vmatpush3.bf16.msra.mxu1 %v2588_v6  ;;  %v2662_v6 = vld [vmem:[%s3679_s1 + $0x548] ss:$12 sps:$4 sm:$0xff]  }
  0x2e   :  { %2402 = vmatprep.subr.bf16.mxu1 %v2592_v7  ;;  %v2604_v7 = vld [vmem:[%s3679_s1 + $0x2d0] ss:$12 sps:$4 sm:$0xff]  }
  0x2f   :  { %1403 = vmatpush1.bf16.msra.mxu0 %v2521_v46  ;;  %v2574_v46 = vld [vmem:[%s3679_s1 + $0x240] ss:$12 sps:$4 sm:$0xff]  }
  0x30   :  { %1404 = vmatprep.subr.bf16.mxu0 %v2522_v47  ;;  %v2581_v47 = vld [vmem:[%s3679_s1 + $0x25c] ss:$12 sps:$4 sm:$0xff]  }
  0x31   :  { %2403 = vmatpush3.bf16.msra.mxu1 %v2593_v11  ;;  %v2663_v11 = vld [vmem:[%s3679_s1 + $0x488] ss:$12 sps:$4 sm:$0xff]  }
  0x32   :  { %2404 = vmatprep.subr.bf16.mxu1 %v2597_v12 }
  0x33   :  { %1405 = vmatpush1.bf16.msra.mxu0 %v2524_v50  ;;  %v2579_v50 = vld [vmem:[%s3679_s1 + $0x258] ss:$12 sps:$4 sm:$0xff]  }
  0x34   :  { %1406 = vmatprep.subr.bf16.mxu0 %v2525_v52  ;;  %v2638_v52 = vld [vmem:[%s3679_s1 + $0x350] ss:$12 sps:$4 sm:$0xff]  }
  0x35   :  { %2405 = vmatpush3.bf16.msra.mxu1 %v2598_v16  ;;  %v2668_v16 = vld [vmem:[%s3679_s1 + $0x4a0] ss:$12 sps:$4 sm:$0xff]  }
  0x36   :  { %2406 = vmatprep.subr.bf16.mxu1 %v2602_v17  ;;  %v2672_v17 = vld [vmem:[%s3679_s1 + $0x578] ss:$12 sps:$4 sm:$0xff]  }
  0x37   :  { %1407 = vmatpush1.bf16.msra.mxu0 %v2527_v55  ;;  %v2591_v55 = vld [vmem:[%s3679_s1 + $0x28c] ss:$12 sps:$4 sm:$0xff]  }
  0x38   :  { %1408 = vmatprep.subr.bf16.mxu0 %v2528_v57  ;;  %v2647_v57 = vld [vmem:[%s3679_s1 + $0x440] ss:$12 sps:$4 sm:$0xff]  }
  0x39   :  { %2407 = vmatpush3.bf16.msra.mxu1 %v2603_v20  ;;  %v2673_v20 = vld [vmem:[%s3679_s1 + $0x4b8] ss:$12 sps:$4 sm:$0xff]  }
  0x3a   :  { %2408 = vmatprep.subr.bf16.mxu1 %v2607_v21  ;;  %v2677_v21 = vld [vmem:[%s3679_s1 + $0x590] ss:$12 sps:$4 sm:$0xff]  }
  0x3b   :  { %1409 = vmatpush1.bf16.msra.mxu0 %v2530_v60  ;;  %v2648_v60 = vld [vmem:[%s3679_s1 + $0x380] ss:$12 sps:$4 sm:$0xff]  }
  0x3c   :  { %1410 = vmatprep.subr.bf16.mxu0 %v2531_v62  ;;  %v2594_v62 = vld [vmem:[%s3679_s1 + $0x2a0] ss:$12 sps:$4 sm:$0xff]  }
  0x3d   :  { %2409 = vmatpush3.bf16.msra.mxu1 %v2608_v24  ;;  %v2678_v24 = vld [vmem:[%s3679_s1 + $0x4d0] ss:$12 sps:$4 sm:$0xff]  }
  0x3e   :  { %2410 = vmatprep.subr.bf16.mxu1 %v2612_v25  ;;  %v2682_v25 = vld [vmem:[%s3679_s1 + $0x5a8] ss:$12 sps:$4 sm:$0xff]  }
  0x3f   :  { %1411 = vmatpush1.bf16.msra.mxu0 %v2533_v2  ;;  %v2599_v2 = vld [vmem:[%s3679_s1 + $0x2b8] ss:$12 sps:$4 sm:$0xff]  }
  0x40   :  { %1421 = vmatprep.subr.bf16.mxu0 %v2538_v5  ;;  %v66_v5 = vcombine.high %v3064_v9, %v3064_v9 }
  0x41   :  { %2411 = vmatpush3.bf16.msra.mxu1 %v2613_v28  ;;  %v2683_v28 = vld [vmem:[%s3679_s1 + $0x4e8] ss:$12 sps:$4 sm:$0xff]  }
  0x42   :  { %1413 = vmatmul.mubr.bf16.vlgmr.msra.gmra.mrb[0].mxu0 %v75_v0  ;;  %2412 = vmatprep.subr.bf16.mxu1 %v2617_v29  ;;  %v2653_v0 = vld [vmem:[%s3679_s1 + $0x398] ss:$12 sps:$4 sm:$0xff]   ;;  %v3256_v12 = vpack.c.bf16 %v66_v5, %v66_v5  ;;  %v2687_v29 = vld [vmem:[%s3679_s1 + $0x5c0] ss:$12 sps:$4 sm:$0xff]  }
  0x43   :  { %1422 = vmatpush1.bf16.msra.mxu0 %v2536_v8  ;;  %1453 = vmatprep.mubr.bf16.mxu0 %v78_v4  ;;  %v2658_v4 = vld [vmem:[%s3679_s1 + $0x3b0] ss:$12 sps:$4 sm:$0xff]   ;;  %v2611_v8 = vld [vmem:[%s3679_s1 + $0x2ec] ss:$12 sps:$4 sm:$0xff]  }
  0x44   :  { %1423 = vmatprep.subr.bf16.mxu0 %v2541_v10  ;;  %v3251_v10 = vpack.c.bf16 %v2957_v35, %v2957_v35  ;;  %v2616_v35 = vld [vmem:[%s3679_s1 + $0x304] ss:$12 sps:$4 sm:$0xff]  }
  0x45   :  { %2413 = vmatpush3.bf16.msra.mxu1 %v2618_v32  ;;  %v2688_v32 = vld [vmem:[%s3679_s1 + $0x500] ss:$12 sps:$4 sm:$0xff]   ;;  %v2710_v5 = vld [vmem:[%s3679_s1 + $0x4e4] ss:$12 sps:$4 sm:$0xff]  }
  0x46   :  { %2420 = vmatprep.subr.bf16.mxu1 %v2622_v34  ;;  %v2634_v34 = vld [vmem:[%s3679_s1 + $0x360] ss:$12 sps:$4 sm:$0xff]  }
  0x47   :  { %1424 = vmatpush1.bf16.msra.mxu0 %v2539_v14  ;;  %v2667_v14 = vld [vmem:[%s3679_s1 + $0x560] ss:$12 sps:$4 sm:$0xff]  }
  0x48   :  { %1425 = vmatprep.subr.bf16.mxu0 %v2546_v15  ;;  %1617 = vmatmul.mubr.bf16.vlgmr.msra.gmra.mrb[4].mxu1 %v3150_v40  ;;  %v2609_v15 = vld [vmem:[%s3679_s1 + $0x2e8] ss:$12 sps:$4 sm:$0xff]  }
  0x49   :  { %2421 = vmatpush3.bf16.msra.mxu1 %v2623_v38  ;;  %1656 = vmatprep.mubr.bf16.mxu1 %v3146_v39  ;;  %v2697_v38 = vld [vmem:[%s3679_s1 + $0x5f0] ss:$12 sps:$4 sm:$0xff]  }
  0x4a   :  { %2422 = vmatprep.subr.bf16.mxu1 %v2627_v41  ;;  %v2698_v41 = vld [vmem:[%s3679_s1 + $0x530] ss:$12 sps:$4 sm:$0xff]  }
  0x4b   :  { %1426 = vmatpush1.bf16.msra.mxu0 %v2544_v18  ;;  %v2614_v18 = vld [vmem:[%s3679_s1 + $0x300] ss:$12 sps:$4 sm:$0xff]  }
  0x4c   :  { %1427 = vmatprep.subr.bf16.mxu0 %v2551_v19  ;;  %v2621_v19 = vld [vmem:[%s3679_s1 + $0x31c] ss:$12 sps:$4 sm:$0xff]  }
  0x4d   :  { %2423 = vmatpush3.bf16.msra.mxu1 %v2628_v44  ;;  %v3354_v44 = vpack.c.bf16 %v3064_v9, %v3064_v9  ;;  %v2661_v9 = vld [vmem:[%s3679_s1 + $0x3dc] ss:$12 sps:$4 sm:$0xff]  }
  0x4e   :  { %2424 = vmatprep.subr.bf16.mxu1 %v2632_v45  ;;  %v2649_v45 = vld [vmem:[%s3679_s1 + $0x3a8] ss:$12 sps:$4 sm:$0xff]  }
  0x4f   :  { %1428 = vmatpush1.bf16.msra.mxu0 %v2549_v22  ;;  %v2619_v22 = vld [vmem:[%s3679_s1 + $0x318] ss:$12 sps:$4 sm:$0xff]  }
  0x50   :  { %1429 = vmatprep.subr.bf16.mxu0 %v2556_v23  ;;  %v2626_v23 = vld [vmem:[%s3679_s1 + $0x334] ss:$12 sps:$4 sm:$0xff]  }
  0x51   :  { %2425 = vmatpush3.bf16.msra.mxu1 %v2633_v48  ;;  %v2659_v48 = vld [vmem:[%s3679_s1 + $0x3d8] ss:$12 sps:$4 sm:$0xff]  }
  0x52   :  { %2426 = vmatprep.subr.bf16.mxu1 %v2637_v49  ;;  %v2666_v49 = vld [vmem:[%s3679_s1 + $0x3f4] ss:$12 sps:$4 sm:$0xff]  }
  0x53   :  { %1430 = vmatpush1.bf16.msra.mxu0 %v2554_v26  ;;  %v2624_v26 = vld [vmem:[%s3679_s1 + $0x330] ss:$12 sps:$4 sm:$0xff]  }
  0x54   :  { %1431 = vmatprep.subr.bf16.mxu0 %v2561_v27  ;;  %v2631_v27 = vld [vmem:[%s3679_s1 + $0x34c] ss:$12 sps:$4 sm:$0xff]  }
  0x55   :  { %2427 = vmatpush3.bf16.msra.mxu1 %v2638_v52  ;;  %v2669_v52 = vld [vmem:[%s3679_s1 + $0x408] ss:$12 sps:$4 sm:$0xff]  }
  0x56   :  { %2428 = vmatprep.subr.bf16.mxu1 %v2642_v53  ;;  %v2676_v53 = vld [vmem:[%s3679_s1 + $0x424] ss:$12 sps:$4 sm:$0xff]  }
  0x57   :  { %1432 = vmatpush1.bf16.msra.mxu0 %v2559_v30  ;;  %v2629_v30 = vld [vmem:[%s3679_s1 + $0x348] ss:$12 sps:$4 sm:$0xff]  }
  0x58   :  { %1433 = vmatprep.subr.bf16.mxu0 %v2566_v31  ;;  %v2636_v31 = vld [vmem:[%s3679_s1 + $0x364] ss:$12 sps:$4 sm:$0xff]  }
  0x59   :  { %2429 = vmatpush3.bf16.msra.mxu1 %v2643_v56  ;;  %v2679_v56 = vld [vmem:[%s3679_s1 + $0x438] ss:$12 sps:$4 sm:$0xff]  }
  0x5a   :  { %2430 = vmatprep.subr.bf16.mxu1 %v2647_v57  ;;  %v2686_v57 = vld [vmem:[%s3679_s1 + $0x454] ss:$12 sps:$4 sm:$0xff]  }
  0x5b   :  { %1434 = vmatpush1.bf16.msra.mxu0 %v2564_v36  ;;  %v2641_v36 = vld [vmem:[%s3679_s1 + $0x37c] ss:$12 sps:$4 sm:$0xff]  }
  0x5c   :  { %1435 = vmatprep.subr.bf16.mxu0 %v2571_v37  ;;  %v2693_v37 = vld [vmem:[%s3679_s1 + $0x518] ss:$12 sps:$4 sm:$0xff]  }
  0x5d   :  { %2431 = vmatpush3.bf16.msra.mxu1 %v2648_v60  ;;  %v2689_v60 = vld [vmem:[%s3679_s1 + $0x468] ss:$12 sps:$4 sm:$0xff]  }
  0x5e   :  { %2432 = vmatprep.subr.bf16.mxu1 %v2652_v61  ;;  %v2696_v61 = vld [vmem:[%s3679_s1 + $0x484] ss:$12 sps:$4 sm:$0xff]  }
  0x5f   :  { %1436 = vmatpush1.bf16.msra.mxu0 %v2569_v42  ;;  %v2644_v42 = vld [vmem:[%s3679_s1 + $0x390] ss:$12 sps:$4 sm:$0xff]  }
  0x60   :  { %1437 = vmatprep.subr.bf16.mxu0 %v2576_v43  ;;  %v2651_v43 = vld [vmem:[%s3679_s1 + $0x3ac] ss:$12 sps:$4 sm:$0xff]  }
  0x61   :  { %2433 = vmatpush3.bf16.msra.mxu1 %v2653_v0  ;;  %v2699_v0 = vld [vmem:[%s3679_s1 + $0x498] ss:$12 sps:$4 sm:$0xff]  }
  0x62   :  { %2434 = vmatprep.subr.bf16.mxu1 %v2657_v1  ;;  %v2704_v1 = vld [vmem:[%s3679_s1 + $0x4b4] ss:$12 sps:$4 sm:$0xff]  }
  0x63   :  { %1438 = vmatpush1.bf16.msra.mxu0 %v2574_v46  ;;  %v2656_v46 = vld [vmem:[%s3679_s1 + $0x3c4] ss:$12 sps:$4 sm:$0xff]  }
  0x64   :  { %1439 = vmatprep.subr.bf16.mxu0 %v2581_v47  ;;  %v2654_v47 = vld [vmem:[%s3679_s1 + $0x3c0] ss:$12 sps:$4 sm:$0xff]  }
  0x65   :  { %2435 = vmatpush3.bf16.msra.mxu1 %v2658_v4  ;;  %v2705_v4 = vld [vmem:[%s3679_s1 + $0x4c8] ss:$12 sps:$4 sm:$0xff]  }
  0x66   :  { %2442 = vmatprep.subr.bf16.mxu1 %v2662_v6  ;;  %v2708_v6 = vld [vmem:[%s3679_s1 + $0x4e0] ss:$12 sps:$4 sm:$0xff]  }
  0x67   :  { %1440 = vmatpush1.bf16.msra.mxu0 %v2579_v50  ;;  %v2664_v50 = vld [vmem:[%s3679_s1 + $0x3f0] ss:$12 sps:$4 sm:$0xff]  }
  0x68   :  { %1441 = vmatprep.subr.bf16.mxu0 %v2586_v51  ;;  %1657 = vmatmul.mubr.bf16.vlgmr.msra.gmra.mrb[8].mxu1 %v3251_v10  ;;  %v2671_v51 = vld [vmem:[%s3679_s1 + $0x40c] ss:$12 sps:$4 sm:$0xff]  }
  0x69   :  { %2443 = vmatpush3.bf16.msra.mxu1 %v2663_v11  ;;  %1696 = vmatprep.mubr.bf16.mxu1 %v3256_v12  ;;  %v2714_v11 = vld [vmem:[%s3679_s1 + $0x510] ss:$12 sps:$4 sm:$0xff]  }
  0x6a   :  { %2444 = vmatprep.subr.bf16.mxu1 %v2667_v14  ;;  %v2717_v14 = vld [vmem:[%s3679_s1 + $0x528] ss:$12 sps:$4 sm:$0xff]  }
  0x6b   :  { %1442 = vmatpush1.bf16.msra.mxu0 %v2584_v54  ;;  %v2674_v54 = vld [vmem:[%s3679_s1 + $0x420] ss:$12 sps:$4 sm:$0xff]  }
  0x6c   :  { %1443 = vmatprep.subr.bf16.mxu0 %v2591_v55  ;;  %v2681_v55 = vld [vmem:[%s3679_s1 + $0x43c] ss:$12 sps:$4 sm:$0xff]  }
  0x6d   :  { %2445 = vmatpush3.bf16.msra.mxu1 %v2668_v16  ;;  %v2725_v16 = vld [vmem:[%s3679_s1 + $0x55c] ss:$12 sps:$4 sm:$0xff]  }
  0x6e   :  { %2446 = vmatprep.subr.bf16.mxu1 %v2672_v17  ;;  %v2723_v17 = vld [vmem:[%s3679_s1 + $0x558] ss:$12 sps:$4 sm:$0xff]  }
  0x6f   :  { %1444 = vmatpush1.bf16.msra.mxu0 %v2589_v58  ;;  %v2684_v58 = vld [vmem:[%s3679_s1 + $0x450] ss:$12 sps:$4 sm:$0xff]  }
  0x70   :  { %1445 = vmatprep.subr.bf16.mxu0 %v2596_v59  ;;  %v2691_v59 = vld [vmem:[%s3679_s1 + $0x46c] ss:$12 sps:$4 sm:$0xff]  }
  0x71   :  { %2447 = vmatpush3.bf16.msra.mxu1 %v2673_v20  ;;  %v2731_v20 = vld [vmem:[%s3679_s1 + $0x58c] ss:$12 sps:$4 sm:$0xff]  }
  0x72   :  { %2448 = vmatprep.subr.bf16.mxu1 %v2677_v21  ;;  %v2729_v21 = vld [vmem:[%s3679_s1 + $0x588] ss:$12 sps:$4 sm:$0xff]  }
  0x73   :  { %1446 = vmatpush1.bf16.msra.mxu0 %v2594_v62  ;;  %v2694_v62 = vld [vmem:[%s3679_s1 + $0x480] ss:$12 sps:$4 sm:$0xff]  }
  0x74   :  { %1447 = vmatprep.subr.bf16.mxu0 %v2601_v63  ;;  %v2701_v63 = vld [vmem:[%s3679_s1 + $0x49c] ss:$12 sps:$4 sm:$0xff]  }
  0x75   :  { %2449 = vmatpush3.bf16.msra.mxu1 %v2678_v24  ;;  %v2737_v24 = vld [vmem:[%s3679_s1 + $0x5bc] ss:$12 sps:$4 sm:$0xff]  }
  0x76   :  { %2450 = vmatprep.subr.bf16.mxu1 %v2682_v25  ;;  %v2735_v25 = vld [vmem:[%s3679_s1 + $0x5b8] ss:$12 sps:$4 sm:$0xff]  }
  0x77   :  { %1448 = vmatpush1.bf16.msra.mxu0 %v2599_v2  ;;  %v2702_v2 = vld [vmem:[%s3679_s1 + $0x4b0] ss:$12 sps:$4 sm:$0xff]  }
  0x78   :  { %1449 = vmatprep.subr.bf16.mxu0 %v2606_v3  ;;  %v2707_v3 = vld [vmem:[%s3679_s1 + $0x4cc] ss:$12 sps:$4 sm:$0xff]  }
  0x79   :  { %2451 = vmatpush3.bf16.msra.mxu1 %v2683_v28  ;;  %v2743_v28 = vld [vmem:[%s3679_s1 + $0x5ec] ss:$12 sps:$4 sm:$0xff]  }
  0x7a   :  { %2452 = vmatprep.subr.bf16.mxu1 %v2687_v29  ;;  %v2744_v29 = vld [vmem:[%s3681_s3] ss:$8 sps:$4 sm:$0xff]  }
  0x7b   :  { %1450 = vmatpush1.bf16.msra.mxu0 %v2604_v7  ;;  %v2713_v7 = vld [vmem:[%s3679_s1 + $0x4fc] ss:$12 sps:$4 sm:$0xff]  }
  0x7c   :  { %1451 = vmatprep.subr.bf16.mxu0 %v2611_v8  ;;  %v2711_v8 = vld [vmem:[%s3679_s1 + $0x4f8] ss:$12 sps:$4 sm:$0xff]  }
  0x7d   :  { %2453 = vmatpush3.bf16.msra.mxu1 %v2688_v32  ;;  %v2741_v32 = vld [vmem:[%s3679_s1 + $0x5e8] ss:$12 sps:$4 sm:$0xff]  }
  0x7e   :  { %2454 = vmatprep.subr.bf16.mxu1 %v2692_v33  ;;  %v2747_v33 = vld [vmem:[%s3681_s3 + $0x10] ss:$8 sps:$4 sm:$0xff]  }
  0x7f   :  { %1452 = vmatpush1.bf16.msra.mxu0 %v2609_v15  ;;  %v2722_v15 = vld [vmem:[%s3679_s1 + $0x544] ss:$12 sps:$4 sm:$0xff]  }
  0x80   :  { %1462 = vmatprep.subr.bf16.mxu0 %v2616_v35  ;;  %v2720_v35 = vld [vmem:[%s3679_s1 + $0x540] ss:$12 sps:$4 sm:$0xff]  }
  0x81   :  { %2455 = vmatpush3.bf16.msra.mxu1 %v2693_v37  ;;  %v2755_v37 = vld [vmem:[%s3681_s3 + $0x34] ss:$8 sps:$4 sm:$0xff]  }
  0x82   :  { %1454 = vmatmul.mubr.bf16.vlgmr.msra.gmra.mrb[0].mxu0 %v3150_v40  ;;  %v2646_v40 = vld [vmem:[%s3679_s1 + $0x394] ss:$12 sps:$4 sm:$0xff]   ;;  %2456 = vmatprep.subr.bf16.mxu1 %v2697_v38  ;;  %v2753_v38 = vld [vmem:[%s3681_s3 + $0x30] ss:$8 sps:$4 sm:$0xff]  }
  0x83   :  { %1463 = vmatpush1.bf16.msra.mxu0 %v2614_v18  ;;  %1494 = vmatprep.mubr.bf16.mxu0 %v3146_v39  ;;  %v2639_v39 = vld [vmem:[%s3679_s1 + $0x378] ss:$12 sps:$4 sm:$0xff]   ;;  %v2728_v18 = vld [vmem:[%s3679_s1 + $0x574] ss:$12 sps:$4 sm:$0xff]  }
  0x84   :  { %1464 = vmatprep.subr.bf16.mxu0 %v2621_v19  ;;  %v2726_v19 = vld [vmem:[%s3679_s1 + $0x570] ss:$12 sps:$4 sm:$0xff]  }
  0x85   :  { %2457 = vmatpush3.bf16.msra.mxu1 %v2698_v41  ;;  %v2761_v41 = vld [vmem:[%s3681_s3 + $0x54] ss:$8 sps:$4 sm:$0xff]  }
  0x87   :  { %1465 = vmatpush1.bf16.msra.mxu0 %v2619_v22  ;;  %v2734_v22 = vld [vmem:[%s3679_s1 + $0x5a4] ss:$12 sps:$4 sm:$0xff]  }
  0x88   :  { %1466 = vmatprep.subr.bf16.mxu0 %v2626_v23  ;;  %1697 = vmatmul.mubr.bf16.vlgmr.msra.gmra.mrb[12].mxu1 %v3354_v44  ;;  %v2732_v23 = vld [vmem:[%s3679_s1 + $0x5a0] ss:$12 sps:$4 sm:$0xff]  }
  0x8b   :  { %1467 = vmatpush1.bf16.msra.mxu0 %v2624_v26  ;;  %v2740_v26 = vld [vmem:[%s3679_s1 + $0x5d4] ss:$12 sps:$4 sm:$0xff]  }
  0x8c   :  { %1468 = vmatprep.subr.bf16.mxu0 %v2631_v27  ;;  %v2738_v27 = vld [vmem:[%s3679_s1 + $0x5d0] ss:$12 sps:$4 sm:$0xff]  }
  0x8f   :  { %1469 = vmatpush1.bf16.msra.mxu0 %v2629_v30  ;;  %v2746_v30 = vld [vmem:[%s3681_s3 + $0x4] ss:$8 sps:$4 sm:$0xff]  }
  0x90   :  { %1470 = vmatprep.subr.bf16.mxu0 %v2636_v31  ;;  %v2749_v31 = vld [vmem:[%s3681_s3 + $0x14] ss:$8 sps:$4 sm:$0xff]   ;;  %2010 = vmatprep.subr.bf16.mxu1 %v2746_v30 }
  0x91   :  { %2011 = vmatpush1.bf16.msra.mxu1 %v2744_v29 }
  0x92   :  { %2012 = vmatprep.subr.bf16.mxu1 %v2749_v31 }
  0x93   :  { %1471 = vmatpush1.bf16.msra.mxu0 %v2634_v34  ;;  %v2752_v34 = vld [vmem:[%s3681_s3 + $0x24] ss:$8 sps:$4 sm:$0xff]  }
  0x94   :  { %1472 = vmatprep.subr.bf16.mxu0 %v2641_v36  ;;  %v2750_v36 = vld [vmem:[%s3681_s3 + $0x20] ss:$8 sps:$4 sm:$0xff]  }
  0x95   :  { %2013 = vmatpush1.bf16.msra.mxu1 %v2747_v33 }
  0x96   :  { %2014 = vmatprep.subr.bf16.mxu1 %v2752_v34 }
  0x97   :  { %1473 = vmatpush1.bf16.msra.mxu0 %v2639_v39  ;;  %v2758_v39 = vld [vmem:[%s3681_s3 + $0x44] ss:$8 sps:$4 sm:$0xff]  }
  0x98   :  { %1474 = vmatprep.subr.bf16.mxu0 %v2646_v40  ;;  %v2756_v40 = vld [vmem:[%s3681_s3 + $0x40] ss:$8 sps:$4 sm:$0xff]  }
  0x99   :  { %2015 = vmatpush1.bf16.msra.mxu1 %v2750_v36 }
  0x9a   :  { %2016 = vmatprep.subr.bf16.mxu1 %v2755_v37 }
  0x9b   :  { %1475 = vmatpush1.bf16.msra.mxu0 %v2644_v42  ;;  %v2759_v42 = vld [vmem:[%s3681_s3 + $0x50] ss:$8 sps:$4 sm:$0xff]  }
  0x9c   :  { %1476 = vmatprep.subr.bf16.mxu0 %v2651_v43  ;;  %v2764_v43 = vld [vmem:[%s3681_s3 + $0x64] ss:$8 sps:$4 sm:$0xff]  }
  0x9d   :  { %2017 = vmatpush1.bf16.msra.mxu1 %v2753_v38 }
  0x9e   :  { %2018 = vmatprep.subr.bf16.mxu1 %v2758_v39 }
  0x9f   :  { %1477 = vmatpush1.bf16.msra.mxu0 %v2649_v45 }
  0xa0   :  { %1478 = vmatprep.subr.bf16.mxu0 %v2656_v46 }
  0xa1   :  { %2019 = vmatpush1.bf16.msra.mxu1 %v2756_v40 }
  0xa2   :  { %2020 = vmatprep.subr.bf16.mxu1 %v2761_v41  ;;  %v2792_v41 = vld [vmem:[%s3681_s3 + $0x100] ss:$8 sps:$4 sm:$0xff]  }
  0xa3   :  { %1479 = vmatpush1.bf16.msra.mxu0 %v2654_v47 }
  0xa4   :  { %1480 = vmatprep.subr.bf16.mxu0 %v2661_v9 }
  0xa5   :  { %2021 = vmatpush1.bf16.msra.mxu1 %v2759_v42 }
  0xa6   :  { %2022 = vmatprep.subr.bf16.mxu1 %v2764_v43  ;;  %v2795_v43 = vld [vmem:[%s3681_s3 + $0x110] ss:$8 sps:$4 sm:$0xff]  }
  0xa7   :  { %1481 = vmatpush1.bf16.msra.mxu0 %v2659_v48  ;;  %v2767_v48 = vld [vmem:[%s3681_s3 + $0x74] ss:$8 sps:$4 sm:$0xff]  }
  0xa8   :  { %1482 = vmatprep.subr.bf16.mxu0 %v2666_v49 }
  0xab   :  { %1483 = vmatpush1.bf16.msra.mxu0 %v2664_v50  ;;  %v2765_v50 = vld [vmem:[%s3681_s3 + $0x70] ss:$8 sps:$4 sm:$0xff]  }
  0xac   :  { %1484 = vmatprep.subr.bf16.mxu0 %v2671_v51  ;;  %v2770_v51 = vld [vmem:[%s3681_s3 + $0x84] ss:$8 sps:$4 sm:$0xff]  }
  0xaf   :  { %1485 = vmatpush1.bf16.msra.mxu0 %v2669_v52  ;;  %v2768_v52 = vld [vmem:[%s3681_s3 + $0x80] ss:$8 sps:$4 sm:$0xff]  }
  0xb0   :  { %1486 = vmatprep.subr.bf16.mxu0 %v2676_v53  ;;  %v2773_v53 = vld [vmem:[%s3681_s3 + $0x94] ss:$8 sps:$4 sm:$0xff]  }
  0xb3   :  { %1487 = vmatpush1.bf16.msra.mxu0 %v2674_v54  ;;  %v2771_v54 = vld [vmem:[%s3681_s3 + $0x90] ss:$8 sps:$4 sm:$0xff]  }
  0xb4   :  { %1488 = vmatprep.subr.bf16.mxu0 %v2681_v55  ;;  %v2776_v55 = vld [vmem:[%s3681_s3 + $0xa4] ss:$8 sps:$4 sm:$0xff]  }
  0xb7   :  { %1489 = vmatpush1.bf16.msra.mxu0 %v2679_v56  ;;  %v2774_v56 = vld [vmem:[%s3681_s3 + $0xa0] ss:$8 sps:$4 sm:$0xff]  }
  0xb8   :  { %1490 = vmatprep.subr.bf16.mxu0 %v2686_v57  ;;  %v2779_v57 = vld [vmem:[%s3681_s3 + $0xb4] ss:$8 sps:$4 sm:$0xff]  }
  0xbb   :  { %1491 = vmatpush1.bf16.msra.mxu0 %v2684_v58  ;;  %v2777_v58 = vld [vmem:[%s3681_s3 + $0xb0] ss:$8 sps:$4 sm:$0xff]  }
  0xbc   :  { %1492 = vmatprep.subr.bf16.mxu0 %v2691_v59  ;;  %v2782_v59 = vld [vmem:[%s3681_s3 + $0xc4] ss:$8 sps:$4 sm:$0xff]  }
  0xbf   :  { %1493 = vmatpush1.bf16.msra.mxu0 %v2689_v60  ;;  %v351_v60 = vsub.s32 2, %v2889_v13 }
  0xc0   :  { %1503 = vmatprep.subr.bf16.mxu0 %v2696_v61  ;;  %v339_v61 = vld [vmem:[%s3682_s2] sm:$0x7] }
  0xc2   :  { %1495 = vmatmul.mubr.bf16.vlgmr.msra.gmra.mrb[0].mxu0 %v3251_v10  ;;  %v2716_v10 = vld [vmem:[%s3679_s1 + $0x514] ss:$12 sps:$4 sm:$0xff]  }
  0xc3   :  { %1504 = vmatpush1.bf16.msra.mxu0 %v2694_v62  ;;  %1535 = vmatprep.mubr.bf16.mxu0 %v3256_v12  ;;  %v2719_v12 = vld [vmem:[%s3679_s1 + $0x52c] ss:$12 sps:$4 sm:$0xff]   ;;  %v2780_v62 = vld [vmem:[%s3681_s3 + $0xc0] ss:$8 sps:$4 sm:$0xff]  }
  0xc4   :  { %1505 = vmatprep.subr.bf16.mxu0 %v2701_v63  ;;  %v2785_v63 = vld [vmem:[%s3681_s3 + $0xd4] ss:$8 sps:$4 sm:$0xff]  }
  0xc7   :  { %1506 = vmatpush1.bf16.msra.mxu0 %v2699_v0  ;;  %v352_v0 = vrot.slane %v339_v61, %v351_v60 }
  0xc8   :  { %1507 = vmatprep.subr.bf16.mxu0 %v2704_v1  ;;  %v2783_v1 = vld [vmem:[%s3681_s3 + $0xd0] ss:$8 sps:$4 sm:$0xff]  }
  0xcb   :  { %1508 = vmatpush1.bf16.msra.mxu0 %v2702_v2 }
  0xcc   :  { %1509 = vmatprep.subr.bf16.mxu0 %v2707_v3 }
  0xcf   :  { %1510 = vmatpush1.bf16.msra.mxu0 %v2705_v4 }
  0xd0   :  { %1511 = vmatprep.subr.bf16.mxu0 %v2710_v5 }
  0xd3   :  { %1512 = vmatpush1.bf16.msra.mxu0 %v2708_v6 }
  0xd4   :  { %1513 = vmatprep.subr.bf16.mxu0 %v2713_v7 }
  0xd7   :  { %1514 = vmatpush1.bf16.msra.mxu0 %v2711_v8 }
  0xd8   :  { %1515 = vmatprep.subr.bf16.mxu0 %v2716_v10 }
  0xdb   :  { %1516 = vmatpush1.bf16.msra.mxu0 %v2714_v11 }
  0xdc   :  { %1517 = vmatprep.subr.bf16.mxu0 %v2719_v12 }
  0xdf   :  { %1518 = vmatpush1.bf16.msra.mxu0 %v2717_v14 }
  0xe0   :  { %1519 = vmatprep.subr.bf16.mxu0 %v2722_v15 }
  0xe3   :  { %1520 = vmatpush1.bf16.msra.mxu0 %v2720_v35 }
  0xe4   :  { %1521 = vmatprep.subr.bf16.mxu0 %v2725_v16  ;;  %v2788_v16 = vld [vmem:[%s3681_s3 + $0xe4] ss:$8 sps:$4 sm:$0xff]  }
  0xe7   :  { %1522 = vmatpush1.bf16.msra.mxu0 %v2723_v17  ;;  %v2786_v17 = vld [vmem:[%s3681_s3 + $0xe0] ss:$8 sps:$4 sm:$0xff]  }
  0xe8   :  { %1523 = vmatprep.subr.bf16.mxu0 %v2728_v18  ;;  %v2791_v18 = vld [vmem:[%s3681_s3 + $0xf4] ss:$8 sps:$4 sm:$0xff]  }
  0xeb   :  { %1524 = vmatpush1.bf16.msra.mxu0 %v2726_v19  ;;  %v2789_v19 = vld [vmem:[%s3681_s3 + $0xf0] ss:$8 sps:$4 sm:$0xff]  }
  0xec   :  { %1525 = vmatprep.subr.bf16.mxu0 %v2731_v20  ;;  %v2794_v20 = vld [vmem:[%s3681_s3 + $0x104] ss:$8 sps:$4 sm:$0xff]  }
  0xef   :  { %1526 = vmatpush1.bf16.msra.mxu0 %v2729_v21 }
  0xf0   :  { %1527 = vmatprep.subr.bf16.mxu0 %v2734_v22 }
  0xf3   :  { %1528 = vmatpush1.bf16.msra.mxu0 %v2732_v23 }
  0xf4   :  { %1529 = vmatprep.subr.bf16.mxu0 %v2737_v24 }
  0xf7   :  { %1530 = vmatpush1.bf16.msra.mxu0 %v2735_v25 }
  0xf8   :  { %1531 = vmatprep.subr.bf16.mxu0 %v2740_v26 }
  0xfb   :  { %1532 = vmatpush1.bf16.msra.mxu0 %v2738_v27  ;;  %v2392_v45 = vpop.f32.mrb[0].mxu1  ;;  %v3611_v27 = vsub.s32 0, %v2889_v13 }
  0xfc   :  { %1533 = vmatprep.subr.bf16.mxu0 %v2743_v28  ;;  %v2393_v46 = vpop.f32.mrb[1].mxu1  ;;  %v3614_v28 = vsub.s32 1, %v2889_v13  ;;  %v2797_v13 = vld [vmem:[%s3681_s3 + $0x114] ss:$8 sps:$4 sm:$0xff]  }
  0xfd   :  { %v2394_v47 = vadd.f32 %v2393_v46, %v2392_v45  ;;  %v2395_v9 = vpop.f32.mrb[2].mxu1  ;;  %v344_v29 = vrot.slane %v339_v61, %v3611_v27  ;;  %v2800_v45 = vld [vmem:[%s3681_s3 + $0x124] ss:$8 sps:$4 sm:$0xff]   ;;  %v2798_v46 = vld [vmem:[%s3681_s3 + $0x120] ss:$8 sps:$4 sm:$0xff]  }
  0xfe   :  { %v2396_v49 = vpop.f32.mrb[3].mxu1  ;;  %v348_v30 = vrot.slane %v339_v61, %v3614_v28  ;;  %v2801_v9 = vld [vmem:[%s3681_s3 + $0x130] ss:$8 sps:$4 sm:$0xff]  }
  0xff   :  { %1534 = vmatpush1.bf16.msra.mxu0 %v2741_v32  ;;  %v1579_v2 = vadd.f32 %v2394_v47, %v352_v0  ;;  %v2803_v47 = vld [vmem:[%s3681_s3 + $0x134] ss:$8 sps:$4 sm:$0xff]   ;;  %v2804_v49 = vld [vmem:[%s3681_s3 + $0x140] ss:$8 sps:$4 sm:$0xff]  }
 0x102   :  { %1536 = vmatmul.mubr.bf16.vlgmr.msra.gmra.mrb[0].mxu0 %v3354_v44  ;;  %v2762_v44 = vld [vmem:[%s3681_s3 + $0x60] ss:$8 sps:$4 sm:$0xff]  }
 0x103   :  { %2023 = vmatpush1.bf16.msra.mxu1 %v2762_v44  ;;  %v2821_v44 = vmov 0  }
 0x104   :  { %2024 = vmatprep.subr.bf16.mxu1 %v2767_v48  ;;  %v2806_v48 = vld [vmem:[%s3681_s3 + $0x144] ss:$8 sps:$4 sm:$0xff]  }
 0x107   :  { %2025 = vmatpush1.bf16.msra.mxu1 %v2765_v50  ;;  %v2809_v50 = vld [vmem:[%s3681_s3 + $0x154] ss:$8 sps:$4 sm:$0xff]  }
 0x108   :  { %2026 = vmatprep.subr.bf16.mxu1 %v2770_v51  ;;  %v2807_v51 = vld [vmem:[%s3681_s3 + $0x150] ss:$8 sps:$4 sm:$0xff]  }
 0x10b   :  { %2027 = vmatpush1.bf16.msra.mxu1 %v2768_v52  ;;  %v2812_v52 = vld [vmem:[%s3681_s3 + $0x164] ss:$8 sps:$4 sm:$0xff]  }
 0x10c   :  { %2028 = vmatprep.subr.bf16.mxu1 %v2773_v53  ;;  %v2810_v53 = vld [vmem:[%s3681_s3 + $0x160] ss:$8 sps:$4 sm:$0xff]  }
 0x10f   :  { %2029 = vmatpush1.bf16.msra.mxu1 %v2771_v54  ;;  %v2815_v54 = vld [vmem:[%s3681_s3 + $0x174] ss:$8 sps:$4 sm:$0xff]  }
 0x110   :  { %2030 = vmatprep.subr.bf16.mxu1 %v2776_v55  ;;  %v2813_v55 = vld [vmem:[%s3681_s3 + $0x170] ss:$8 sps:$4 sm:$0xff]  }
 0x113   :  { %2031 = vmatpush1.bf16.msra.mxu1 %v2774_v56 }
 0x114   :  { %2032 = vmatprep.subr.bf16.mxu1 %v2779_v57 }
 0x117   :  { %2033 = vmatpush1.bf16.msra.mxu1 %v2777_v58  ;;  %v12_v58 = vstv %s3683_s6 }
 0x118   :  { %2034 = vmatprep.subr.bf16.mxu1 %v2782_v59  ;;  %13 = vst [vmem:[#allocation2] sm:$0x1] %v12_v58  ;;  %v1758_v59 = vld [vmem:[%s3684_s4] sm:$0x3] }
 0x119   :  { %v1763_v60 = vrot.slane %v1758_v59, %v3611_v27  ;;  %v1767_v61 = vrot.slane %v1758_v59, %v3614_v28 }
 0x11b   :  { %2035 = vmatpush1.bf16.msra.mxu1 %v2780_v62  ;;  %v2414_v3 = vpop.f32.mrb[4].mxu1  ;;  %v2094_v62 = vld [vmem:[%s3685_s5] sm:$0x3] }
 0x11c   :  { %2036 = vmatprep.subr.bf16.mxu1 %v2785_v63  ;;  %v2415_v4 = vpop.f32.mrb[5].mxu1 }
 0x11d   :  { %v2416_v5 = vadd.f32 %v2415_v4, %v2414_v3  ;;  %v2417_v6 = vpop.f32.mrb[6].mxu1 }
 0x11e   :  { %v2418_v7 = vpop.f32.mrb[7].mxu1 }
 0x11f   :  { %2037 = vmatpush1.bf16.msra.mxu1 %v2783_v1  ;;  %v1619_v8 = vadd.f32 %v2416_v5, %v1579_v2  ;;  %v2099_v2 = vrot.slane %v2094_v62, %v3611_v27  ;;  %v2103_v5 = vrot.slane %v2094_v62, %v3614_v28 }
 0x120   :  { %2038 = vmatprep.subr.bf16.mxu1 %v2788_v16 }
 0x123   :  { %2039 = vmatpush1.bf16.msra.mxu1 %v2786_v17 }
 0x124   :  { %2040 = vmatprep.subr.bf16.mxu1 %v2791_v18 }
 0x127   :  { %2041 = vmatpush1.bf16.msra.mxu1 %v2789_v19 }
 0x128   :  { %2051 = vmatprep.subr.bf16.mxu1 %v2794_v20 }
 0x13b   :  { %v2436_v10 = vpop.f32.mrb[8].mxu1 }
 0x13c   :  { %v2437_v11 = vpop.f32.mrb[9].mxu1 }
 0x13d   :  { %v2438_v12 = vadd.f32 %v2437_v11, %v2436_v10  ;;  %v2439_v14 = vpop.f32.mrb[10].mxu1 }
 0x13e   :  { %v2440_v15 = vpop.f32.mrb[11].mxu1 }
 0x13f   :  { %v1659_v35 = vadd.f32 %v2438_v12, %v1619_v8 }
 0x15b   :  { %v2458_v21 = vpop.f32.mrb[12].mxu1 }
 0x15c   :  { %v2459_v22 = vpop.f32.mrb[13].mxu1 }
 0x15d   :  { %v2460_v23 = vadd.f32 %v2459_v22, %v2458_v21  ;;  %v2461_v24 = vpop.f32.mrb[14].mxu1 }
 0x15e   :  { %v2462_v25 = vpop.f32.mrb[15].mxu1 }
 0x15f   :  { %v1699_v26 = vadd.f32 %v2460_v23, %v1659_v35  ;;  %v2374_v35 = vld [vmem:[#allocation2] ss:$0 sm:$0xff] }
 0x161   :  { %v1706_v56 = vmax.f32 %v1699_v26, 0.0 }
 0x163   :  { %v1709_v57 = vpack.c.bf16 %v1706_v56, %v1706_v56 }
 0x1d5   :  { %v1537_v31 = vpop.f32.mrb[0].mxu0 }
 0x1d6   :  { %v2464_v32 = vadd.f32 %v1537_v31, %v344_v29  ;;  %v1539_v33 = vpop.f32.mrb[1].mxu0 }
 0x1d7   :  { %v2465_v34 = vadd.f32 %v1539_v33, %v348_v30  ;;  %v1541_v36 = vpop.f32.mrb[2].mxu0 }
 0x1d8   :  { %v1704_v37 = vmax.f32 %v2464_v32, 0.0  ;;  %v1542_v38 = vpop.f32.mrb[3].mxu0 }
 0x1d9   :  { %v1705_v39 = vmax.f32 %v2465_v34, 0.0 }
 0x1da   :  { %v1707_v42 = vpack.c.bf16 %v1704_v37, %v1704_v37 }
 0x1db   :  { %v1708_v40 = vpack.c.bf16 %v1705_v39, %v1705_v39 }
 0x1dd   :  { %2042 = vmatprep.mubr.bf16.mxu1 %v1708_v40 }
 0x1de   :  { %2043 = vmatmul.mubr.bf16.vlgmr.msra.gmra.mrb[16].mxu1 %v1707_v42 }
 0x1df   :  { %2052 = vmatpush1.bf16.msra.mxu1 %v2792_v41  ;;  %2083 = vmatprep.mubr.bf16.mxu1 %v2821_v44 }
 0x1e0   :  { %2053 = vmatprep.subr.bf16.mxu1 %v2797_v13 }
 0x1e3   :  { %2054 = vmatpush1.bf16.msra.mxu1 %v2795_v43 }
 0x1e4   :  { %2055 = vmatprep.subr.bf16.mxu1 %v2800_v45 }
 0x1e7   :  { %2056 = vmatpush1.bf16.msra.mxu1 %v2798_v46 }
 0x1e8   :  { %2057 = vmatprep.subr.bf16.mxu1 %v2803_v47 }
 0x1eb   :  { %2058 = vmatpush1.bf16.msra.mxu1 %v2801_v9 }
 0x1ec   :  { %2059 = vmatprep.subr.bf16.mxu1 %v2806_v48 }
 0x1ef   :  { %2060 = vmatpush1.bf16.msra.mxu1 %v2804_v49 }
 0x1f0   :  { %2061 = vmatprep.subr.bf16.mxu1 %v2809_v50 }
 0x1f3   :  { %2062 = vmatpush1.bf16.msra.mxu1 %v2807_v51 }
 0x1f4   :  { %2063 = vmatprep.subr.bf16.mxu1 %v2812_v52 }
 0x1f7   :  { %2064 = vmatpush1.bf16.msra.mxu1 %v2810_v53 }
 0x1f8   :  { %2065 = vmatprep.subr.bf16.mxu1 %v2815_v54 }
 0x1fb   :  { %2066 = vmatpush1.bf16.msra.mxu1 %v2813_v55 }
 0x1fe   :  { %2084 = vmatmul.mubr.bf16.vlgmr.msra.gmra.mrb[16].mxu1 %v1709_v57 }
 0x2d1   :  { %v2085_v63 = vpop.f32.mrb[16].mxu1 }
 0x2d2   :  { %v2466_v0 = vadd.f32 %v2085_v63, %v1763_v60  ;;  %v2087_v1 = vpop.f32.mrb[17].mxu1 }
 0x2d3   :  { %v2467_v3 = vadd.f32 %v2087_v1, %v1767_v61  ;;  %v2089_v4 = vpop.f32.mrb[18].mxu1 }
 0x2d4   :  { %v2092_v6 = vmax.f32 %v2466_v0, 0.0  ;;  %v2090_v7 = vpop.f32.mrb[19].mxu1 }
 0x2d5   :  { %v2093_v8 = vmax.f32 %v2467_v3, 0.0 }
 0x2d6   :  { %v2106_v10 = vmul.f32 %v2099_v2, %v2092_v6 }
 0x2d7   :  { %v2107_v11 = vmul.f32 %v2103_v5, %v2093_v8 }
 0x2d8   :  { %v2109_v12 = vsel %vm2108_vm0, %v2106_v10, 0.0 }
 0x2d9   :  { %v2110_v14 = vsel %vm2108_vm0, %v2107_v11, 0.0 }
 0x2da   :  { %v2111_v15 = vadd.f32 %v2110_v14, %v2109_v12 }
 0x2dc   :  { %2112 = vadd.xlane.f32.xlu0 %v2111_v15 }
 0x369   :  { %v2113_v16 = vpop.xlane.xlu0 %2112 }
 0x36a   :  { %v2121_v17 = vadd.f32 %v2374_v35, %v2113_v16 }
 0x36c   :  { %v2375_v18 = vmul.f32 -1.442695, %v2121_v17 }
 0x36e   :  { %2816 = vpow2.f32 %v2375_v18 }
 0x378   :  { %v2817_v19 = vpop.eup %2816 }
 0x379   :  { %v2125_v20 = vadd.f32 1.0, %v2817_v19 }
 0x37b   :  { %2818 = vrcp.f32 %v2125_v20 }
 0x385   :  { %v2819_v21 = vpop.eup %2818 }
 0x386   :  { %2129 = vst.msk [vmem:[%s3686_s7] sm:$0x3] %vm2128_vm1, %v2819_v21 }

</bundles_post_ra>
